<compile_context>
chip_gen: v7x
topology: tpu7x:2x2x1
jax: 0.10.0
libtpu: 0.0.40
codegen_flags: <defaults>
</compile_context>

<pallas_src>
import functools

import jax
import jax.numpy as jnp
from jax import lax
from jax.experimental import pallas as pl
from jax.experimental.pallas import tpu as pltpu


GP = 128          # lane-padded GCN hidden width
MAX_TILE = 512    # A row / K tile (sweep 512-1024 on v5e/v6e)


def _round_up(v, m):
    return (v + m - 1) // m * m


def _vmem_cap_bytes():
    # Generation-specific cap: physical VMEM minus headroom
    # (v5e/v6e 128 MiB -> ~112 MiB, v7x 64 MiB -> ~56 MiB).
    try:
        cap = int(getattr(pltpu.get_tpu_info(), "vmem_capacity_bytes", 64 << 20))
    except Exception:
        cap = 64 << 20
    return max(cap - max(cap // 8, 8 << 20), 32 << 20)


def _working_set_bytes(tile, gp, nb):
    # True double-buffered requirement of the two streaming kernels.
    a = 2 * tile * tile                    # int8 A tile
    xw = 2 * tile * gp * 2                 # bf16 streamed XW / H1W2 K-block
    drow = 2 * tile * 4                    # f32 row scale
    bias = 2 * gp * 4
    acc = tile * gp * 4                    # f32 accumulator scratch
    k1 = a + xw + drow + bias + acc + 2 * gp * gp * 2 + 2 * tile * gp * 2
    k2 = a + xw + drow + bias + acc + 2 * nb * tile * 2 + 2 * nb * gp * 4
    return max(k1, k2)


# ---------------------------------------------------------------------------
# Kernel 1: layer-1 aggregation (K-tiled) + layer-2 linear term, with the
# D^-1/2 normalization folded in:
#   o[r] = ( d_r * relu( d_r * (A_int8[r, :] @ XW1s) + b1 ) ) @ W2
# ---------------------------------------------------------------------------
def gcn1_kernel(a_ref, xw_ref, d_ref, b_ref, w2_ref, o_ref, acc_ref):
    k = pl.program_id(1)

    @pl.when(k == 0)
    def _():
        acc_ref[...] = jnp.zeros_like(acc_ref)

    # int8 0/1 adjacency -> bf16 on the VPU (exact), MXU accumulate in f32.
    a = a_ref[...].astype(jnp.bfloat16)
    acc_ref[...] += jnp.dot(a, xw_ref[...], preferred_element_type=jnp.float32)

    # NOTE: o_ref is written only on the last K step; its out_spec block index
    # is constant along K, so Pallas keeps the block resident across K and
    # writes it back once (standard accumulator/epilogue pattern).
    @pl.when(k == pl.num_programs(1) - 1)
    def _():
        h1 = jnp.maximum(d_ref[...] * acc_ref[...] + b_ref[...], 0.0)
        h1s = (d_ref[...] * h1).astype(jnp.bfloat16)   # layer-2 column scale folded in
        o_ref[...] = jnp.dot(h1s, w2_ref[...],
                             preferred_element_type=jnp.float32).astype(jnp.bfloat16)


def gcn_layer1(a, xw1s, d_row, b1, w2, tile, vmem_limit):
    np_, gp = xw1s.shape
    nr = np_ // tile
    return pl.pallas_call(
        gcn1_kernel,
        grid=(nr, nr),
        in_specs=[pl.BlockSpec((tile, tile), lambda r, k: (r, k)),   # A int8 (streamed)
                  pl.BlockSpec((tile, gp), lambda r, k: (k, 0)),     # d-scaled X@W1 (bf16)
                  pl.BlockSpec((tile, 1), lambda r, k: (r, 0)),      # d^-1/2 row scale
                  pl.BlockSpec((1, gp), lambda r, k: (0, 0)),        # b1
                  pl.BlockSpec((gp, gp), lambda r, k: (0, 0))],      # W2 (bf16)
        out_specs=pl.BlockSpec((tile, gp), lambda r, k: (r, 0)),
        out_shape=jax.ShapeDtypeStruct((np_, gp), jnp.bfloat16),
        scratch_shapes=[pltpu.VMEM((tile, gp), jnp.float32)],
        compiler_params=pltpu.CompilerParams(
            dimension_semantics=("parallel", "arbitrary"),
            vmem_limit_bytes=vmem_limit),
    )(a, xw1s, d_row, b1, w2)


# ---------------------------------------------------------------------------
# Kernel 2: layer-2 aggregation (K-tiled) + per-row-tile partial mean-pool
# sums (row axis stays "parallel" -> megacore usable):
#   partial[r] = pool[:, r-tile] @ relu( d_r * (A_int8[r, :] @ H1W2s) + b2 )
# ---------------------------------------------------------------------------
def gcn2_kernel(a_ref, hw_ref, d_ref, b_ref, pool_ref, o_ref, acc_ref):
    k = pl.program_id(1)

    @pl.when(k == 0)
    def _():
        acc_ref[...] = jnp.zeros_like(acc_ref)

    a = a_ref[...].astype(jnp.bfloat16)
    acc_ref[...] += jnp.dot(a, hw_ref[...], preferred_element_type=jnp.float32)

    @pl.when(k == pl.num_programs(1) - 1)
    def _():
        h2 = jnp.maximum(d_ref[...] * acc_ref[...] + b_ref[...], 0.0).astype(jnp.bfloat16)
        o_ref[...] = jnp.dot(pool_ref[...], h2,
                             preferred_element_type=jnp.float32)[None]


def gcn_layer2_pool(a, h1w2s, d_row, b2, pool_mat, tile, vmem_limit):
    np_, gp = h1w2s.shape
    nb = pool_mat.shape[0]
    nr = np_ // tile
    return pl.pallas_call(
        gcn2_kernel,
        grid=(nr, nr),
        in_specs=[pl.BlockSpec((tile, tile), lambda r, k: (r, k)),   # A int8 (streamed)
                  pl.BlockSpec((tile, gp), lambda r, k: (k, 0)),     # H1W2s (bf16)
                  pl.BlockSpec((tile, 1), lambda r, k: (r, 0)),      # d^-1/2 row scale
                  pl.BlockSpec((1, gp), lambda r, k: (0, 0)),        # b2
                  pl.BlockSpec((nb, tile), lambda r, k: (0, r))],    # pool one-hot tile
        out_specs=pl.BlockSpec((1, nb, gp), lambda r, k: (r, 0, 0)),
        out_shape=jax.ShapeDtypeStruct((nr, nb, gp), jnp.float32),
        scratch_shapes=[pltpu.VMEM((tile, gp), jnp.float32)],
        compiler_params=pltpu.CompilerParams(
            dimension_semantics=("parallel", "arbitrary"),
            vmem_limit_bytes=vmem_limit),
    )(a, h1w2s, d_row, b2, pool_mat)


# ---------------------------------------------------------------------------
# Kernel 3 (micro): reduce partial pooled sums + mean (inv-count multiply) +
# single-step LSTM cell (h0 = c0 = 0, forget gate dead) + fused heads.
# ---------------------------------------------------------------------------
def head_kernel(part_ref, invc_ref, wi_ref, bi_ref, wg_ref, bg_ref,
                wo_ref, bo_ref, wh_ref, bh_ref, y_ref, *, num_classes):
    pooled = jnp.sum(part_ref[...], axis=0) * invc_ref[...]        # (nb, GP) f32
    g_i = jax.nn.sigmoid(jnp.dot(pooled, wi_ref[...],
                                 preferred_element_type=jnp.float32) + bi_ref[...])
    g_g = jnp.tanh(jnp.dot(pooled, wg_ref[...],
                           preferred_element_type=jnp.float32) + bg_ref[...])
    g_o = jax.nn.sigmoid(jnp.dot(pooled, wo_ref[...],
                                 preferred_element_type=jnp.float32) + bo_ref[...])
    c_t = g_i * g_g                       # forget gate * c0 == 0, dropped
    h_t = g_o * jnp.tanh(c_t)
    y = jnp.dot(h_t, wh_ref[...], preferred_element_type=jnp.float32) + bh_ref[...]
    lane = lax.broadcasted_iota(jnp.int32, y.shape, 1)
    sp = jnp.maximum(y, 0.0) + jnp.log(1.0 + jnp.exp(-jnp.abs(y)))  # stable softplus
    y_ref[...] = jnp.where(lane < num_classes, y, sp)


def pool_lstm_heads(partial, inv_counts, w_i, b_i, w_g, b_g, w_o, b_o,
                    w_head, b_head, num_classes, vmem_limit):
    nr, nb, gp = partial.shape
    h = w_i.shape[1]
    c2 = w_head.shape[1]

    def full(shape):
        return pl.BlockSpec(shape, lambda i, _s=len(shape): (0,) * _s)

    kernel = functools.partial(head_kernel, num_classes=num_classes)
    return pl.pallas_call(
        kernel,
        grid=(1,),
        in_specs=[full((nr, nb, gp)), full((nb, 1)),
                  full((gp, h)), full((1, h)),
                  full((gp, h)), full((1, h)),
                  full((gp, h)), full((1, h)),
                  full((h, c2)), full((1, c2))],
        out_specs=full((nb, c2)),
        out_shape=jax.ShapeDtypeStruct((nb, c2), jnp.float32),
        compiler_params=pltpu.CompilerParams(
            dimension_semantics=("arbitrary",),
            vmem_limit_bytes=vmem_limit),
    )(partial, inv_counts, w_i, b_i, w_g, b_g, w_o, b_o, w_head, b_head)


# ---------------------------------------------------------------------------
# Wrapper glue (XLA): O(E) degrees, int8 adjacency scatter, tiny X@W1,
# pool matrix, LSTM/heads weight prep.
# ---------------------------------------------------------------------------
def gcn_lstm_probabilistic_forward(x, edge_index, batch, params, num_graphs):
    n = x.shape[0]
    g = params["w1"].shape[1]
    h = params["w_mean"].shape[0]
    c = params["w_mean"].shape[1]
    gp = _round_up(g, GP)

    cap = _vmem_cap_bytes()
    np128 = _round_up(n, 128)
    if np128 <= MAX_TILE:
        tile = np128                                 # single row / K tile
    else:
        tile = MAX_TILE
        while tile > 128 and _working_set_bytes(tile, gp, num_graphs) + (4 << 20) > cap:
            tile //= 2                               # shrink if over VMEM budget
    np_ = _round_up(n, tile)
    vmem_limit = int(min(cap, max(4 * _working_set_bytes(tile, gp, num_graphs), 32 << 20)))

    src, dst = edge_index[0], edge_index[1]
    num_edges = src.shape[0]

    # O(E) degrees, GCNConv gcn_norm / add_remaining_self_loops semantics.
    deg_in = jnp.zeros((n,), jnp.float32).at[dst].add(jnp.ones(num_edges, jnp.float32))
    self_cnt = jnp.zeros((n,), jnp.float32).at[dst].add(
        (src == dst).astype(jnp.float32))
    deg = deg_in + (self_cnt == 0).astype(jnp.float32)     # deg >= 1 always
    d_inv_sqrt = lax.rsqrt(deg)
    d_row = jnp.pad(d_inv_sqrt, (0, np_ - n)).reshape(np_, 1)

    # Raw adjacency scattered straight into the padded int8 buffer (no f32 pass).
    a = jnp.zeros((np_, np_), jnp.int8)
    a = a.at[dst, src].add(jnp.ones(num_edges, jnp.int8))
    idx = jnp.arange(n)
    a = a.at[idx, idx].set(jnp.where(self_cnt > 0.0, self_cnt, 1.0).astype(jnp.int8))

    # Tiny X @ W1 in XLA, with the d^-1/2 column scale folded in.
    w1p = jnp.pad(params["w1"].astype(jnp.float32), ((0, 0), (0, gp - g)))
    xw1s = (x.astype(jnp.float32) @ w1p) * d_inv_sqrt[:, None]
    xw1s = jnp.pad(xw1s, ((0, np_ - n), (0, 0))).astype(jnp.bfloat16)

    b1 = jnp.pad(params["b1"], (0, gp - g)).reshape(1, gp).astype(jnp.float32)
    w2 = jnp.pad(params["w2"], ((0, gp - g), (0, gp - g))).astype(jnp.bfloat16)
    b2 = jnp.pad(params["b2"], (0, gp - g)).reshape(1, gp).astype(jnp.float32)

    # Mean-pool: exact one-hot in bf16 + f32 inverse counts (no divide in-kernel).
    onehot = (batch[None, :] == jnp.arange(num_graphs)[:, None]).astype(jnp.float32)
    inv_counts = 1.0 / jnp.maximum(onehot.sum(axis=1, keepdims=True), 1.0)
    pool_mat = jnp.pad(onehot, ((0, 0), (0, np_ - n))).astype(jnp.bfloat16)

    # LSTM single step, h0 = c0 = 0: W_hh contributes nothing, forget gate dead.
    # Gate order i, f, g, o; split per gate (no sub-128 lane slicing in-kernel).
    w_ih = params["w_ih"].astype(jnp.float32)
    bias = (params["b_ih"] + params["b_hh"]).astype(jnp.float32)

    def gate(kk):
        wk = jnp.pad(w_ih[:, kk * h:(kk + 1) * h], ((0, gp - g), (0, 0)))
        return wk, bias[kk * h:(kk + 1) * h].reshape(1, h)

    w_i, b_i = gate(0)
    w_g, b_g = gate(2)
    w_o, b_o = gate(3)

    # Fused heads: [mean | log_var_linear].
    w_head = jnp.concatenate([params["w_mean"], params["w_lv"]], axis=1).astype(jnp.float32)
    b_head = jnp.concatenate([params["b_mean"], params["b_lv"]]
                             ).reshape(1, 2 * c).astype(jnp.float32)

    h1w2s = gcn_layer1(a, xw1s, d_row, b1, w2, tile, vmem_limit)
    partial = gcn_layer2_pool(a, h1w2s, d_row, b2, pool_mat, tile, vmem_limit)
    y = pool_lstm_heads(partial, inv_counts, w_i, b_i, w_g, b_g, w_o, b_o,
                        w_head, b_head, c, vmem_limit)
    return y[:, :c], y[:, c:]


if __name__ == "__main__":
    # Small, deterministic configuration.
    num_node_features = 8
    gcn_hidden_dim = 16
    lstm_hidden_dim = 32
    num_classes = 4
    num_nodes = 16
    num_graphs = 2
    num_edges = 32

    key = jax.random.PRNGKey(0)
    keys = jax.random.split(key, 12)

    x = jax.random.normal(keys[0], (num_nodes, num_node_features), jnp.float32)
    edge_index = jax.random.randint(keys[1], (2, num_edges), 0, num_nodes)
    batch = jnp.concatenate([jnp.zeros(num_nodes // 2, jnp.int32),
                             jnp.ones(num_nodes - num_nodes // 2, jnp.int32)])

    s = 0.1
    params = {
        # GCNConv weights (applied as X @ W, bias added after aggregation)
        "w1": s * jax.random.normal(keys[2], (num_node_features, gcn_hidden_dim), jnp.float32),
        "b1": s * jax.random.normal(keys[3], (gcn_hidden_dim,), jnp.float32),
        "w2": s * jax.random.normal(keys[4], (gcn_hidden_dim, gcn_hidden_dim), jnp.float32),
        "b2": s * jax.random.normal(keys[5], (gcn_hidden_dim,), jnp.float32),
        # LSTM (gate order i, f, g, o); W_hh omitted since h0 == 0.
        "w_ih": s * jax.random.normal(keys[6], (gcn_hidden_dim, 4 * lstm_hidden_dim), jnp.float32),
        "b_ih": s * jax.random.normal(keys[7], (4 * lstm_hidden_dim,), jnp.float32),
        "b_hh": s * jax.random.normal(keys[8], (4 * lstm_hidden_dim,), jnp.float32),
        # heads
        "w_mean": s * jax.random.normal(keys[9], (lstm_hidden_dim, num_classes), jnp.float32),
        "b_mean": s * jax.random.normal(keys[10], (num_classes,), jnp.float32),
        "w_lv": s * jax.random.normal(keys[11], (lstm_hidden_dim, num_classes), jnp.float32),
        "b_lv": jnp.zeros((num_classes,), jnp.float32),
    }

    mean, log_var = jax.jit(
        lambda x_, ei_, b_: gcn_lstm_probabilistic_forward(x_, ei_, b_, params, num_graphs)
    )(x, edge_index, batch)
    jax.block_until_ready((mean, log_var))

    assert mean.shape == (num_graphs, num_classes)
    assert log_var.shape == (num_graphs, num_classes)
    assert bool(jnp.all(jnp.isfinite(mean))) and bool(jnp.all(jnp.isfinite(log_var)))
    assert bool(jnp.all(log_var >= 0.0))  # softplus output is non-negative
    print("KERNEL_OK")
</pallas_src>

<mosaic_0001>
module attributes {stable_mosaic.version = 11 : i64} {
  func.func private @main(%arg0: i32) attributes {dimension_semantics = [#tpu.dimension_semantics<core_parallel>], iteration_bounds = array<i64: 2>, tpu.core_type = #tpu.core_type<sc_scalar_subcore>, window_params = []} {
    return
  }
}

module attributes {stable_mosaic.version = 11 : i64} {
  func.func private @main(%arg0: i32) attributes {dimension_semantics = [#tpu.dimension_semantics<core_parallel>], iteration_bounds = array<i64: 2>, tpu.core_type = #tpu.core_type<sc_scalar_subcore>, window_params = []} {
    return
  }
}

module attributes {stable_mosaic.version = 11 : i64} {
  func.func @head_kernel(%arg0: i32, %arg1: memref<1x2x128xf32, #tpu.memory_space<vmem>>, %arg2: memref<2x1xf32, #tpu.memory_space<vmem>>, %arg3: memref<128x32xf32, #tpu.memory_space<vmem>>, %arg4: memref<1x32xf32, #tpu.memory_space<vmem>>, %arg5: memref<128x32xf32, #tpu.memory_space<vmem>>, %arg6: memref<1x32xf32, #tpu.memory_space<vmem>>, %arg7: memref<128x32xf32, #tpu.memory_space<vmem>>, %arg8: memref<1x32xf32, #tpu.memory_space<vmem>>, %arg9: memref<32x8xf32, #tpu.memory_space<vmem>>, %arg10: memref<1x8xf32, #tpu.memory_space<vmem>>, %arg11: memref<2x8xf32, #tpu.memory_space<vmem>>) attributes {dimension_semantics = [#tpu.dimension_semantics<arbitrary>], iteration_bounds = array<i64: 1>, scalar_prefetch = 0 : i64, scratch_operands = 0 : i64, tpu.core_type = #tpu.core_type<tc>, window_params = [{pipeline_mode = #tpu.pipeline_mode<synchronous>, transform_indices = @transform_0, window_bounds = array<i64: 1, 2, 128>}, {pipeline_mode = #tpu.pipeline_mode<synchronous>, transform_indices = @transform_1, window_bounds = array<i64: 2, 1>}, {pipeline_mode = #tpu.pipeline_mode<synchronous>, transform_indices = @transform_2, window_bounds = array<i64: 128, 32>}, {pipeline_mode = #tpu.pipeline_mode<synchronous>, transform_indices = @transform_3, window_bounds = array<i64: 1, 32>}, {pipeline_mode = #tpu.pipeline_mode<synchronous>, transform_indices = @transform_4, window_bounds = array<i64: 128, 32>}, {pipeline_mode = #tpu.pipeline_mode<synchronous>, transform_indices = @transform_5, window_bounds = array<i64: 1, 32>}, {pipeline_mode = #tpu.pipeline_mode<synchronous>, transform_indices = @transform_6, window_bounds = array<i64: 128, 32>}, {pipeline_mode = #tpu.pipeline_mode<synchronous>, transform_indices = @transform_7, window_bounds = array<i64: 1, 32>}, {pipeline_mode = #tpu.pipeline_mode<synchronous>, transform_indices = @transform_8, window_bounds = array<i64: 32, 8>}, {pipeline_mode = #tpu.pipeline_mode<synchronous>, transform_indices = @transform_9, window_bounds = array<i64: 1, 8>}, {pipeline_mode = #tpu.pipeline_mode<synchronous>, transform_indices = @transform_10, window_bounds = array<i64: 2, 8>}]} {
    %c0 = arith.constant 0 : index
    %c0_0 = arith.constant 0 : index
    %c0_1 = arith.constant 0 : index
    %0 = vector.load %arg1[%c0, %c0_0, %c0_1] : memref<1x2x128xf32, #tpu.memory_space<vmem>>, vector<1x2x128xf32>
    %cst = arith.constant dense<0.000000e+00> : vector<2x128xf32>
    %1 = vector.multi_reduction <add>, %0, %cst [0] : vector<1x2x128xf32> to vector<2x128xf32>
    %c0_2 = arith.constant 0 : index
    %c0_3 = arith.constant 0 : index
    %2 = vector.load %arg2[%c0_2, %c0_3] : memref<2x1xf32, #tpu.memory_space<vmem>>, vector<2x1xf32>
    %3 = vector.broadcast %2 : vector<2x1xf32> to vector<2x128xf32>
    %4 = arith.mulf %1, %3 : vector<2x128xf32>
    %c0_4 = arith.constant 0 : index
    %c0_5 = arith.constant 0 : index
    %5 = vector.load %arg3[%c0_4, %c0_5] : memref<128x32xf32, #tpu.memory_space<vmem>>, vector<128x32xf32>
    %cst_6 = arith.constant dense<0.000000e+00> : vector<2x32xf32>
    %6 = tpu.matmul %4, %5, %cst_6 {dimension_numbers = #tpu.dot_dimension_numbers<[1], [0], [0], [1], [0, 0, 1, 1], [], []>} : vector<2x128xf32>, vector<128x32xf32>, vector<2x32xf32> -> vector<2x32xf32>
    %c0_7 = arith.constant 0 : index
    %c0_8 = arith.constant 0 : index
    %7 = vector.load %arg4[%c0_7, %c0_8] : memref<1x32xf32, #tpu.memory_space<vmem>>, vector<1x32xf32>
    %8 = vector.broadcast %7 : vector<1x32xf32> to vector<2x32xf32>
    %9 = arith.addf %6, %8 : vector<2x32xf32>
    %10 = arith.negf %9 : vector<2x32xf32>
    %11 = math.exp %10 : vector<2x32xf32>
    %cst_9 = arith.constant 1.000000e+00 : f32
    %12 = vector.broadcast %cst_9 : f32 to vector<2x32xf32>
    %13 = arith.addf %12, %11 : vector<2x32xf32>
    %14 = arith.divf %12, %13 : vector<2x32xf32>
    %c0_10 = arith.constant 0 : index
    %c0_11 = arith.constant 0 : index
    %15 = vector.load %arg5[%c0_10, %c0_11] : memref<128x32xf32, #tpu.memory_space<vmem>>, vector<128x32xf32>
    %cst_12 = arith.constant dense<0.000000e+00> : vector<2x32xf32>
    %16 = tpu.matmul %4, %15, %cst_12 {dimension_numbers = #tpu.dot_dimension_numbers<[1], [0], [0], [1], [0, 0, 1, 1], [], []>} : vector<2x128xf32>, vector<128x32xf32>, vector<2x32xf32> -> vector<2x32xf32>
    %c0_13 = arith.constant 0 : index
    %c0_14 = arith.constant 0 : index
    %17 = vector.load %arg6[%c0_13, %c0_14] : memref<1x32xf32, #tpu.memory_space<vmem>>, vector<1x32xf32>
    %18 = vector.broadcast %17 : vector<1x32xf32> to vector<2x32xf32>
    %19 = arith.addf %16, %18 : vector<2x32xf32>
    %20 = math.tanh %19 : vector<2x32xf32>
    %c0_15 = arith.constant 0 : index
    %c0_16 = arith.constant 0 : index
    %21 = vector.load %arg7[%c0_15, %c0_16] : memref<128x32xf32, #tpu.memory_space<vmem>>, vector<128x32xf32>
    %cst_17 = arith.constant dense<0.000000e+00> : vector<2x32xf32>
    %22 = tpu.matmul %4, %21, %cst_17 {dimension_numbers = #tpu.dot_dimension_numbers<[1], [0], [0], [1], [0, 0, 1, 1], [], []>} : vector<2x128xf32>, vector<128x32xf32>, vector<2x32xf32> -> vector<2x32xf32>
    %c0_18 = arith.constant 0 : index
    %c0_19 = arith.constant 0 : index
    %23 = vector.load %arg8[%c0_18, %c0_19] : memref<1x32xf32, #tpu.memory_space<vmem>>, vector<1x32xf32>
    %24 = vector.broadcast %23 : vector<1x32xf32> to vector<2x32xf32>
    %25 = arith.addf %22, %24 : vector<2x32xf32>
    %26 = arith.negf %25 : vector<2x32xf32>
    %27 = math.exp %26 : vector<2x32xf32>
    %cst_20 = arith.constant 1.000000e+00 : f32
    %28 = vector.broadcast %cst_20 : f32 to vector<2x32xf32>
    %29 = arith.addf %28, %27 : vector<2x32xf32>
    %30 = arith.divf %28, %29 : vector<2x32xf32>
    %31 = arith.mulf %14, %20 : vector<2x32xf32>
    %32 = math.tanh %31 : vector<2x32xf32>
    %33 = arith.mulf %30, %32 : vector<2x32xf32>
    %c0_21 = arith.constant 0 : index
    %c0_22 = arith.constant 0 : index
    %34 = vector.load %arg9[%c0_21, %c0_22] : memref<32x8xf32, #tpu.memory_space<vmem>>, vector<32x8xf32>
    %cst_23 = arith.constant dense<0.000000e+00> : vector<2x8xf32>
    %35 = tpu.matmul %33, %34, %cst_23 {dimension_numbers = #tpu.dot_dimension_numbers<[1], [0], [0], [1], [0, 0, 1, 1], [], []>} : vector<2x32xf32>, vector<32x8xf32>, vector<2x8xf32> -> vector<2x8xf32>
    %c0_24 = arith.constant 0 : index
    %c0_25 = arith.constant 0 : index
    %36 = vector.load %arg10[%c0_24, %c0_25] : memref<1x8xf32, #tpu.memory_space<vmem>>, vector<1x8xf32>
    %37 = vector.broadcast %36 : vector<1x8xf32> to vector<2x8xf32>
    %38 = arith.addf %35, %37 : vector<2x8xf32>
    %39 = tpu.iota {dimensions = array<i32: 1>} : vector<2x8xi32>
    %cst_26 = arith.constant 0.000000e+00 : f32
    %40 = vector.broadcast %cst_26 : f32 to vector<2x8xf32>
    %41 = arith.maximumf %38, %40 : vector<2x8xf32>
    %42 = math.absf %38 : vector<2x8xf32>
    %cst_27 = arith.constant 0.000000e+00 : f32
    %43 = vector.broadcast %cst_27 : f32 to vector<2x8xf32>
    %44 = arith.subf %43, %42 : vector<2x8xf32>
    %45 = math.exp %44 : vector<2x8xf32>
    %cst_28 = arith.constant 1.000000e+00 : f32
    %46 = vector.broadcast %cst_28 : f32 to vector<2x8xf32>
    %47 = arith.addf %46, %45 : vector<2x8xf32>
    %48 = math.log %47 : vector<2x8xf32>
    %49 = arith.addf %41, %48 : vector<2x8xf32>
    %c4_i32 = arith.constant 4 : i32
    %50 = vector.broadcast %c4_i32 : i32 to vector<2x8xi32>
    %51 = arith.cmpi slt, %39, %50 : vector<2x8xi32>
    %52 = arith.select %51, %38, %49 : vector<2x8xi1>, vector<2x8xf32>
    %c0_29 = arith.constant 0 : index
    %c0_30 = arith.constant 0 : index
    %53 = vector.load %arg11[%c0_29, %c0_30] : memref<2x8xf32, #tpu.memory_space<vmem>>, vector<2x8xf32>
    tpu.vector_store %arg11[%c0_29, %c0_30], %52 {strides = array<i32>} : memref<2x8xf32, #tpu.memory_space<vmem>>, vector<2x8xf32>,
    return
  }
  func.func @transform_0(%arg0: i32) -> (i32, i32, i32) {
    %c0_i32 = arith.constant 0 : i32
    %c0_i32_0 = arith.constant 0 : i32
    %c0_i32_1 = arith.constant 0 : i32
    %c0_i32_2 = arith.constant 0 : i32
    return %c0_i32, %c0_i32_0, %c0_i32_1 : i32, i32, i32
  }
  func.func @transform_1(%arg0: i32) -> (i32, i32) {
    %c0_i32 = arith.constant 0 : i32
    %c0_i32_0 = arith.constant 0 : i32
    %c0_i32_1 = arith.constant 0 : i32
    return %c0_i32, %c0_i32_0 : i32, i32
  }
  func.func @transform_2(%arg0: i32) -> (i32, i32) {
    %c0_i32 = arith.constant 0 : i32
    %c0_i32_0 = arith.constant 0 : i32
    %c0_i32_1 = arith.constant 0 : i32
    return %c0_i32, %c0_i32_0 : i32, i32
  }
  func.func @transform_3(%arg0: i32) -> (i32, i32) {
    %c0_i32 = arith.constant 0 : i32
    %c0_i32_0 = arith.constant 0 : i32
    %c0_i32_1 = arith.constant 0 : i32
    return %c0_i32, %c0_i32_0 : i32, i32
  }
  func.func @transform_4(%arg0: i32) -> (i32, i32) {
    %c0_i32 = arith.constant 0 : i32
    %c0_i32_0 = arith.constant 0 : i32
    %c0_i32_1 = arith.constant 0 : i32
    return %c0_i32, %c0_i32_0 : i32, i32
  }
  func.func @transform_5(%arg0: i32) -> (i32, i32) {
    %c0_i32 = arith.constant 0 : i32
    %c0_i32_0 = arith.constant 0 : i32
    %c0_i32_1 = arith.constant 0 : i32
    return %c0_i32, %c0_i32_0 : i32, i32
  }
  func.func @transform_6(%arg0: i32) -> (i32, i32) {
    %c0_i32 = arith.constant 0 : i32
    %c0_i32_0 = arith.constant 0 : i32
    %c0_i32_1 = arith.constant 0 : i32
    return %c0_i32, %c0_i32_0 : i32, i32
  }
  func.func @transform_7(%arg0: i32) -> (i32, i32) {
    %c0_i32 = arith.constant 0 : i32
    %c0_i32_0 = arith.constant 0 : i32
    %c0_i32_1 = arith.constant 0 : i32
    return %c0_i32, %c0_i32_0 : i32, i32
  }
  func.func @transform_8(%arg0: i32) -> (i32, i32) {
    %c0_i32 = arith.constant 0 : i32
    %c0_i32_0 = arith.constant 0 : i32
    %c0_i32_1 = arith.constant 0 : i32
    return %c0_i32, %c0_i32_0 : i32, i32
  }
  func.func @transform_9(%arg0: i32) -> (i32, i32) {
    %c0_i32 = arith.constant 0 : i32
    %c0_i32_0 = arith.constant 0 : i32
    %c0_i32_1 = arith.constant 0 : i32
    return %c0_i32, %c0_i32_0 : i32, i32
  }
  func.func @transform_10(%arg0: i32) -> (i32, i32) {
    %c0_i32 = arith.constant 0 : i32
    %c0_i32_0 = arith.constant 0 : i32
    %c0_i32_1 = arith.constant 0 : i32
    return %c0_i32, %c0_i32_0 : i32, i32
  }
}

module attributes {stable_mosaic.version = 11 : i64} {
  func.func @gcn2_kernel(%arg0: i32, %arg1: i32, %arg2: memref<128x128xi8, #tpu.memory_space<vmem>>, %arg3: memref<128x128xbf16, #tpu.memory_space<vmem>>, %arg4: memref<128x1xf32, #tpu.memory_space<vmem>>, %arg5: memref<1x128xf32, #tpu.memory_space<vmem>>, %arg6: memref<2x128xbf16, #tpu.memory_space<vmem>>, %arg7: memref<1x2x128xf32, #tpu.memory_space<vmem>>, %arg8: memref<128x128xf32, #tpu.memory_space<vmem>>) attributes {dimension_semantics = [#tpu.dimension_semantics<parallel>, #tpu.dimension_semantics<arbitrary>], iteration_bounds = array<i64: 1, 1>, scalar_prefetch = 0 : i64, scratch_operands = 1 : i64, tpu.core_type = #tpu.core_type<tc>, window_params = [{transform_indices = @transform_0, window_bounds = array<i64: 128, 128>}, {transform_indices = @transform_1, window_bounds = array<i64: 128, 128>}, {transform_indices = @transform_2, window_bounds = array<i64: 128, 1>}, {pipeline_mode = #tpu.pipeline_mode<synchronous>, transform_indices = @transform_3, window_bounds = array<i64: 1, 128>}, {transform_indices = @transform_4, window_bounds = array<i64: 2, 128>}, {transform_indices = @transform_5, window_bounds = array<i64: 1, 2, 128>}]} {
    %c0_i32 = arith.constant 0 : i32
    %0 = arith.cmpi eq, %arg1, %c0_i32 : i32
    %1 = arith.extui %0 : i1 to i32
    %c0_i32_0 = arith.constant 0 : i32
    %2 = arith.cmpi ne, %1, %c0_i32_0 : i32
    scf.if %2 {
      %cst_10 = arith.constant 0.000000e+00 : f32
      %13 = vector.broadcast %cst_10 : f32 to vector<128x128xf32>
      %c0_11 = arith.constant 0 : index
      %c0_12 = arith.constant 0 : index
      %14 = vector.load %arg8[%c0_11, %c0_12] : memref<128x128xf32, #tpu.memory_space<vmem>>, vector<128x128xf32>
      tpu.vector_store %arg8[%c0_11, %c0_12], %13 {strides = array<i32>} : memref<128x128xf32, #tpu.memory_space<vmem>>, vector<128x128xf32>,
    } else {
    }
    %c0 = arith.constant 0 : index
    %c0_1 = arith.constant 0 : index
    %3 = vector.load %arg2[%c0, %c0_1] : memref<128x128xi8, #tpu.memory_space<vmem>>, vector<128x128xi8>
    %4 = arith.sitofp %3 : vector<128x128xi8> to vector<128x128xbf16>
    %c0_2 = arith.constant 0 : index
    %c0_3 = arith.constant 0 : index
    %5 = vector.load %arg8[%c0_2, %c0_3] : memref<128x128xf32, #tpu.memory_space<vmem>>, vector<128x128xf32>
    %c0_4 = arith.constant 0 : index
    %c0_5 = arith.constant 0 : index
    %6 = vector.load %arg3[%c0_4, %c0_5] : memref<128x128xbf16, #tpu.memory_space<vmem>>, vector<128x128xbf16>
    %cst = arith.constant dense<0.000000e+00> : vector<128x128xf32>
    %7 = tpu.matmul %4, %6, %cst {dimension_numbers = #tpu.dot_dimension_numbers<[1], [0], [0], [1], [0, 0, 1, 1], [], []>} : vector<128x128xbf16>, vector<128x128xbf16>, vector<128x128xf32> -> vector<128x128xf32>
    %8 = arith.addf %5, %7 : vector<128x128xf32>
    %c0_6 = arith.constant 0 : index
    %c0_7 = arith.constant 0 : index
    %9 = vector.load %arg8[%c0_6, %c0_7] : memref<128x128xf32, #tpu.memory_space<vmem>>, vector<128x128xf32>
    tpu.vector_store %arg8[%c0_6, %c0_7], %8 {strides = array<i32>} : memref<128x128xf32, #tpu.memory_space<vmem>>, vector<128x128xf32>,
    %c0_i32_8 = arith.constant 0 : i32
    %10 = arith.cmpi eq, %arg1, %c0_i32_8 : i32
    %11 = arith.extui %10 : i1 to i32
    %c0_i32_9 = arith.constant 0 : i32
    %12 = arith.cmpi ne, %11, %c0_i32_9 : i32
    scf.if %12 {
      %c0_10 = arith.constant 0 : index
      %c0_11 = arith.constant 0 : index
      %13 = vector.load %arg4[%c0_10, %c0_11] : memref<128x1xf32, #tpu.memory_space<vmem>>, vector<128x1xf32>
      %c0_12 = arith.constant 0 : index
      %c0_13 = arith.constant 0 : index
      %14 = vector.load %arg8[%c0_12, %c0_13] : memref<128x128xf32, #tpu.memory_space<vmem>>, vector<128x128xf32>
      %15 = vector.broadcast %13 : vector<128x1xf32> to vector<128x128xf32>
      %16 = arith.mulf %15, %14 : vector<128x128xf32>
      %c0_14 = arith.constant 0 : index
      %c0_15 = arith.constant 0 : index
      %17 = vector.load %arg5[%c0_14, %c0_15] : memref<1x128xf32, #tpu.memory_space<vmem>>, vector<1x128xf32>
      %18 = vector.broadcast %17 : vector<1x128xf32> to vector<128x128xf32>
      %19 = arith.addf %16, %18 : vector<128x128xf32>
      %cst_16 = arith.constant 0.000000e+00 : f32
      %20 = vector.broadcast %cst_16 : f32 to vector<128x128xf32>
      %21 = arith.maximumf %19, %20 : vector<128x128xf32>
      %22 = arith.truncf %21 : vector<128x128xf32> to vector<128x128xbf16>
      %c0_17 = arith.constant 0 : index
      %c0_18 = arith.constant 0 : index
      %23 = vector.load %arg6[%c0_17, %c0_18] : memref<2x128xbf16, #tpu.memory_space<vmem>>, vector<2x128xbf16>
      %cst_19 = arith.constant dense<0.000000e+00> : vector<2x128xf32>
      %24 = tpu.matmul %23, %22, %cst_19 {dimension_numbers = #tpu.dot_dimension_numbers<[1], [0], [0], [1], [0, 0, 1, 1], [], []>} : vector<2x128xbf16>, vector<128x128xbf16>, vector<2x128xf32> -> vector<2x128xf32>
      %25 = vector.shape_cast %24 : vector<2x128xf32> to vector<1x2x128xf32>
      %c0_20 = arith.constant 0 : index
      %c0_21 = arith.constant 0 : index
      %c0_22 = arith.constant 0 : index
      %26 = vector.load %arg7[%c0_20, %c0_21, %c0_22] : memref<1x2x128xf32, #tpu.memory_space<vmem>>, vector<1x2x128xf32>
      tpu.vector_store %arg7[%c0_20, %c0_21, %c0_22], %25 {strides = array<i32>} : memref<1x2x128xf32, #tpu.memory_space<vmem>>, vector<1x2x128xf32>,
    } else {
    }
    return
  }
  func.func @transform_0(%arg0: i32, %arg1: i32) -> (i32, i32) {
    %c0_i32 = arith.constant 0 : i32
    return %arg0, %arg1 : i32, i32
  }
  func.func @transform_1(%arg0: i32, %arg1: i32) -> (i32, i32) {
    %c0_i32 = arith.constant 0 : i32
    %c0_i32_0 = arith.constant 0 : i32
    return %arg1, %c0_i32 : i32, i32
  }
  func.func @transform_2(%arg0: i32, %arg1: i32) -> (i32, i32) {
    %c0_i32 = arith.constant 0 : i32
    %c0_i32_0 = arith.constant 0 : i32
    return %arg0, %c0_i32 : i32, i32
  }
  func.func @transform_3(%arg0: i32, %arg1: i32) -> (i32, i32) {
    %c0_i32 = arith.constant 0 : i32
    %c0_i32_0 = arith.constant 0 : i32
    %c0_i32_1 = arith.constant 0 : i32
    return %c0_i32, %c0_i32_0 : i32, i32
  }
  func.func @transform_4(%arg0: i32, %arg1: i32) -> (i32, i32) {
    %c0_i32 = arith.constant 0 : i32
    %c0_i32_0 = arith.constant 0 : i32
    return %c0_i32, %arg0 : i32, i32
  }
  func.func @transform_5(%arg0: i32, %arg1: i32) -> (i32, i32, i32) {
    %c0_i32 = arith.constant 0 : i32
    %c0_i32_0 = arith.constant 0 : i32
    %c0_i32_1 = arith.constant 0 : i32
    return %arg0, %c0_i32, %c0_i32_0 : i32, i32, i32
  }
}

module attributes {stable_mosaic.version = 11 : i64} {
  func.func @gcn1_kernel(%arg0: i32, %arg1: i32, %arg2: memref<128x128xi8, #tpu.memory_space<vmem>>, %arg3: memref<128x128xbf16, #tpu.memory_space<vmem>>, %arg4: memref<128x1xf32, #tpu.memory_space<vmem>>, %arg5: memref<1x128xf32, #tpu.memory_space<vmem>>, %arg6: memref<128x128xbf16, #tpu.memory_space<vmem>>, %arg7: memref<128x128xbf16, #tpu.memory_space<vmem>>, %arg8: memref<128x128xf32, #tpu.memory_space<vmem>>) attributes {dimension_semantics = [#tpu.dimension_semantics<parallel>, #tpu.dimension_semantics<arbitrary>], iteration_bounds = array<i64: 1, 1>, scalar_prefetch = 0 : i64, scratch_operands = 1 : i64, tpu.core_type = #tpu.core_type<tc>, window_params = [{transform_indices = @transform_0, window_bounds = array<i64: 128, 128>}, {transform_indices = @transform_1, window_bounds = array<i64: 128, 128>}, {transform_indices = @transform_2, window_bounds = array<i64: 128, 1>}, {pipeline_mode = #tpu.pipeline_mode<synchronous>, transform_indices = @transform_3, window_bounds = array<i64: 1, 128>}, {pipeline_mode = #tpu.pipeline_mode<synchronous>, transform_indices = @transform_4, window_bounds = array<i64: 128, 128>}, {transform_indices = @transform_5, window_bounds = array<i64: 128, 128>}]} {
    %c0_i32 = arith.constant 0 : i32
    %0 = arith.cmpi eq, %arg1, %c0_i32 : i32
    %1 = arith.extui %0 : i1 to i32
    %c0_i32_0 = arith.constant 0 : i32
    %2 = arith.cmpi ne, %1, %c0_i32_0 : i32
    scf.if %2 {
      %cst_10 = arith.constant 0.000000e+00 : f32
      %13 = vector.broadcast %cst_10 : f32 to vector<128x128xf32>
      %c0_11 = arith.constant 0 : index
      %c0_12 = arith.constant 0 : index
      %14 = vector.load %arg8[%c0_11, %c0_12] : memref<128x128xf32, #tpu.memory_space<vmem>>, vector<128x128xf32>
      tpu.vector_store %arg8[%c0_11, %c0_12], %13 {strides = array<i32>} : memref<128x128xf32, #tpu.memory_space<vmem>>, vector<128x128xf32>,
    } else {
    }
    %c0 = arith.constant 0 : index
    %c0_1 = arith.constant 0 : index
    %3 = vector.load %arg2[%c0, %c0_1] : memref<128x128xi8, #tpu.memory_space<vmem>>, vector<128x128xi8>
    %4 = arith.sitofp %3 : vector<128x128xi8> to vector<128x128xbf16>
    %c0_2 = arith.constant 0 : index
    %c0_3 = arith.constant 0 : index
    %5 = vector.load %arg8[%c0_2, %c0_3] : memref<128x128xf32, #tpu.memory_space<vmem>>, vector<128x128xf32>
    %c0_4 = arith.constant 0 : index
    %c0_5 = arith.constant 0 : index
    %6 = vector.load %arg3[%c0_4, %c0_5] : memref<128x128xbf16, #tpu.memory_space<vmem>>, vector<128x128xbf16>
    %cst = arith.constant dense<0.000000e+00> : vector<128x128xf32>
    %7 = tpu.matmul %4, %6, %cst {dimension_numbers = #tpu.dot_dimension_numbers<[1], [0], [0], [1], [0, 0, 1, 1], [], []>} : vector<128x128xbf16>, vector<128x128xbf16>, vector<128x128xf32> -> vector<128x128xf32>
    %8 = arith.addf %5, %7 : vector<128x128xf32>
    %c0_6 = arith.constant 0 : index
    %c0_7 = arith.constant 0 : index
    %9 = vector.load %arg8[%c0_6, %c0_7] : memref<128x128xf32, #tpu.memory_space<vmem>>, vector<128x128xf32>
    tpu.vector_store %arg8[%c0_6, %c0_7], %8 {strides = array<i32>} : memref<128x128xf32, #tpu.memory_space<vmem>>, vector<128x128xf32>,
    %c0_i32_8 = arith.constant 0 : i32
    %10 = arith.cmpi eq, %arg1, %c0_i32_8 : i32
    %11 = arith.extui %10 : i1 to i32
    %c0_i32_9 = arith.constant 0 : i32
    %12 = arith.cmpi ne, %11, %c0_i32_9 : i32
    scf.if %12 {
      %c0_10 = arith.constant 0 : index
      %c0_11 = arith.constant 0 : index
      %13 = vector.load %arg4[%c0_10, %c0_11] : memref<128x1xf32, #tpu.memory_space<vmem>>, vector<128x1xf32>
      %c0_12 = arith.constant 0 : index
      %c0_13 = arith.constant 0 : index
      %14 = vector.load %arg8[%c0_12, %c0_13] : memref<128x128xf32, #tpu.memory_space<vmem>>, vector<128x128xf32>
      %15 = vector.broadcast %13 : vector<128x1xf32> to vector<128x128xf32>
      %16 = arith.mulf %15, %14 : vector<128x128xf32>
      %c0_14 = arith.constant 0 : index
      %c0_15 = arith.constant 0 : index
      %17 = vector.load %arg5[%c0_14, %c0_15] : memref<1x128xf32, #tpu.memory_space<vmem>>, vector<1x128xf32>
      %18 = vector.broadcast %17 : vector<1x128xf32> to vector<128x128xf32>
      %19 = arith.addf %16, %18 : vector<128x128xf32>
      %cst_16 = arith.constant 0.000000e+00 : f32
      %20 = vector.broadcast %cst_16 : f32 to vector<128x128xf32>
      %21 = arith.maximumf %19, %20 : vector<128x128xf32>
      %c0_17 = arith.constant 0 : index
      %c0_18 = arith.constant 0 : index
      %22 = vector.load %arg4[%c0_17, %c0_18] : memref<128x1xf32, #tpu.memory_space<vmem>>, vector<128x1xf32>
      %23 = vector.broadcast %22 : vector<128x1xf32> to vector<128x128xf32>
      %24 = arith.mulf %23, %21 : vector<128x128xf32>
      %25 = arith.truncf %24 : vector<128x128xf32> to vector<128x128xbf16>
      %c0_19 = arith.constant 0 : index
      %c0_20 = arith.constant 0 : index
      %26 = vector.load %arg6[%c0_19, %c0_20] : memref<128x128xbf16, #tpu.memory_space<vmem>>, vector<128x128xbf16>
      %cst_21 = arith.constant dense<0.000000e+00> : vector<128x128xf32>
      %27 = tpu.matmul %25, %26, %cst_21 {dimension_numbers = #tpu.dot_dimension_numbers<[1], [0], [0], [1], [0, 0, 1, 1], [], []>} : vector<128x128xbf16>, vector<128x128xbf16>, vector<128x128xf32> -> vector<128x128xf32>
      %28 = arith.truncf %27 : vector<128x128xf32> to vector<128x128xbf16>
      %c0_22 = arith.constant 0 : index
      %c0_23 = arith.constant 0 : index
      %29 = vector.load %arg7[%c0_22, %c0_23] : memref<128x128xbf16, #tpu.memory_space<vmem>>, vector<128x128xbf16>
      tpu.vector_store %arg7[%c0_22, %c0_23], %28 {strides = array<i32>} : memref<128x128xbf16, #tpu.memory_space<vmem>>, vector<128x128xbf16>,
    } else {
    }
    return
  }
  func.func @transform_0(%arg0: i32, %arg1: i32) -> (i32, i32) {
    %c0_i32 = arith.constant 0 : i32
    return %arg0, %arg1 : i32, i32
  }
  func.func @transform_1(%arg0: i32, %arg1: i32) -> (i32, i32) {
    %c0_i32 = arith.constant 0 : i32
    %c0_i32_0 = arith.constant 0 : i32
    return %arg1, %c0_i32 : i32, i32
  }
  func.func @transform_2(%arg0: i32, %arg1: i32) -> (i32, i32) {
    %c0_i32 = arith.constant 0 : i32
    %c0_i32_0 = arith.constant 0 : i32
    return %arg0, %c0_i32 : i32, i32
  }
  func.func @transform_3(%arg0: i32, %arg1: i32) -> (i32, i32) {
    %c0_i32 = arith.constant 0 : i32
    %c0_i32_0 = arith.constant 0 : i32
    %c0_i32_1 = arith.constant 0 : i32
    return %c0_i32, %c0_i32_0 : i32, i32
  }
  func.func @transform_4(%arg0: i32, %arg1: i32) -> (i32, i32) {
    %c0_i32 = arith.constant 0 : i32
    %c0_i32_0 = arith.constant 0 : i32
    %c0_i32_1 = arith.constant 0 : i32
    return %c0_i32, %c0_i32_0 : i32, i32
  }
  func.func @transform_5(%arg0: i32, %arg1: i32) -> (i32, i32) {
    %c0_i32 = arith.constant 0 : i32
    %c0_i32_0 = arith.constant 0 : i32
    return %arg0, %c0_i32 : i32, i32
  }
}

</mosaic_0001>

<bundles_post_ra>
// kernel: _lambda_.4
= control target key start
LH: loop header
LB: loop body
LE: loop exit
PB: predicated region body
PF: predicated region fallthrough
CT: control target
= control target key end

     0   :  { %v661_v1 = vmov 0   ;;  %vm663_vm0 = vmmov 0   ;;  %s850_s1 = inlined_call_operand.vmem [shape: bf16[128,128], index: 1, kind: input, shape index: {}]   ;;  %s851_s0 = inlined_call_operand.vmem [shape: s8[128,128], index: 0, kind: input, shape index: {}]   ;;  %s852_s2 = inlined_call_operand.vmem [shape: f32[128,1], index: 2, kind: input, shape index: {}]   ;;  %s853_s3 = inlined_call_operand.vmem [shape: f32[1,128], index: 3, kind: input, shape index: {}]   ;;  %s854_s4 = inlined_call_operand.vmem [shape: bf16[2,128], index: 4, kind: input, shape index: {}]   ;;  %s855_s5 = inlined_call_operand.vmem [shape: f32[1,2,128], index: 5, kind: output, shape index: {}]  }
   0x1   :  { %v653_v0 = vld [vmem:[%s850_s1] sm:$0xff]   ;;  %651 = vset.pattern.permute.xlu0 %v661_v1  ;;  %652 = vset.pattern.permute.xlu1 %v661_v1  ;;  %v654_v2 = vld [vmem:[%s850_s1 + $0x8] sm:$0xff]   ;;  %v655_v3 = vld [vmem:[%s850_s1 + $0x10] sm:$0xff]   ;;  %v662_v1 = vmov 0.0  }
   0x2   :  { %596 = vmatprep.subr.bf16.mxu0 %v653_v0  ;;  %v656_v4 = vld [vmem:[%s850_s1 + $0x18] sm:$0xff]   ;;  %v41_v5 = vld [vmem:[%s851_s0] sm:$0x3]  ;;  %v42_v6 = vld [vmem:[%s851_s0 + $0x2] sm:$0x3]  ;;  %628 = vmatprep.subr.bf16.mxu1 %v662_v1 }
   0x3   :  { %597 = vmatpush3.bf16.msra.mxu0 %v653_v0  ;;  %v57_v7 = vunpack.c.l.s8.bf16 %v41_v5  ;;  %v58_v8 = vunpack.c.l.s8.bf16 %v42_v6  ;;  %v657_v10 = vld [vmem:[%s850_s1 + $0x20] sm:$0xff]   ;;  %v335_v12 = vld [vmem:[%s852_s2 + $0x10] sm:$0xff]  ;;  %v334_v13 = vld [vmem:[%s852_s2 + $0x8] sm:$0xff]  ;;  %644 = vmatprep.mubr.msk.bf16.mxu1 %vm663_vm0, %v662_v1 }
   0x4   :  { %598 = vmatprep.subr.bf16.mxu0 %v654_v2  ;;  %v333_v11 = vld [vmem:[%s852_s2] sm:$0xff]  ;;  %377 = vperm.xlu1 %652, %v335_v12   ;;  %v336_v14 = vld [vmem:[%s852_s2 + $0x18] sm:$0xff]  ;;  %v658_v15 = vld [vmem:[%s850_s1 + $0x28] sm:$0xff]  }
   0x5   :  { %v554_v9 = vcombine.low %v57_v7, %v58_v8  ;;  %367 = vperm.xlu0 %651, %v333_v11   ;;  %v337_v16 = vld [vmem:[%s852_s2 + $0x20] sm:$0xff]  ;;  %v338_v17 = vld [vmem:[%s852_s2 + $0x28] sm:$0xff]  ;;  %v659_v18 = vld [vmem:[%s850_s1 + $0x30] sm:$0xff]  }
   0x6   :  { %v43_v19 = vld [vmem:[%s851_s0 + $0x4] sm:$0x3]  ;;  %v44_v20 = vld [vmem:[%s851_s0 + $0x6] sm:$0x3]  ;;  %v339_v21 = vld [vmem:[%s852_s2 + $0x30] sm:$0xff] }
   0x7   :  { %599 = vmatpush3.bf16.msra.mxu0 %v654_v2  ;;  %612 = vmatprep.mubr.bf16.mxu0 %v554_v9  ;;  %v340_v22 = vld [vmem:[%s852_s2 + $0x38] sm:$0xff]  ;;  %v45_v24 = vld [vmem:[%s851_s0 + $0x8] sm:$0x3]  ;;  %v46_v25 = vld [vmem:[%s851_s0 + $0xa] sm:$0x3]  ;;  %v59_v26 = vunpack.c.l.s8.bf16 %v43_v19  ;;  %v60_v27 = vunpack.c.l.s8.bf16 %v44_v20 }
   0x8   :  { %600 = vmatprep.subr.bf16.mxu0 %v655_v3  ;;  %382 = vperm.xlu1 %652, %v336_v14   ;;  %v660_v23 = vld [vmem:[%s850_s1 + $0x38] sm:$0xff]   ;;  %v61_v28 = vunpack.c.l.s8.bf16 %v45_v24  ;;  %v62_v29 = vunpack.c.l.s8.bf16 %v46_v25  ;;  %v341_v30 = vld [vmem:[%s852_s2 + $0x40] sm:$0xff]  ;;  %v342_v31 = vld [vmem:[%s852_s2 + $0x48] sm:$0xff] }
   0x9   :  { %372 = vperm.xlu0 %651, %v334_v13   ;;  %v555_v32 = vcombine.low %v59_v26, %v60_v27  ;;  %v47_v34 = vld [vmem:[%s851_s0 + $0xc] sm:$0x3]  ;;  %v48_v35 = vld [vmem:[%s851_s0 + $0xe] sm:$0x3]  ;;  %v343_v36 = vld [vmem:[%s852_s2 + $0x50] sm:$0xff] }
   0xa   :  { %v556_v33 = vcombine.low %v61_v28, %v62_v29  ;;  %v49_v37 = vld [vmem:[%s851_s0 + $0x10] sm:$0x3]  ;;  %v50_v38 = vld [vmem:[%s851_s0 + $0x12] sm:$0x3]  ;;  %v344_v39 = vld [vmem:[%s852_s2 + $0x58] sm:$0xff]  ;;  %v63_v40 = vunpack.c.l.s8.bf16 %v47_v34  ;;  %v64_v41 = vunpack.c.l.s8.bf16 %v48_v35 }
   0xb   :  { %601 = vmatpush3.bf16.msra.mxu0 %v655_v3  ;;  %v65_v42 = vunpack.c.l.s8.bf16 %v49_v37  ;;  %v66_v43 = vunpack.c.l.s8.bf16 %v50_v38  ;;  %v345_v44 = vld [vmem:[%s852_s2 + $0x60] sm:$0xff]  ;;  %v346_v45 = vld [vmem:[%s852_s2 + $0x68] sm:$0xff]  ;;  %v51_v48 = vld [vmem:[%s851_s0 + $0x14] sm:$0x3] }
   0xc   :  { %602 = vmatprep.subr.bf16.mxu0 %v656_v4  ;;  %392 = vperm.xlu1 %652, %v338_v17   ;;  %v557_v46 = vcombine.low %v63_v40, %v64_v41  ;;  %v52_v49 = vld [vmem:[%s851_s0 + $0x16] sm:$0x3]  ;;  %v53_v51 = vld [vmem:[%s851_s0 + $0x18] sm:$0x3]  ;;  %v54_v52 = vld [vmem:[%s851_s0 + $0x1a] sm:$0x3]  ;;  %v67_v54 = vunpack.c.l.s8.bf16 %v51_v48 }
   0xd   :  { %387 = vperm.xlu0 %651, %v337_v16   ;;  %v558_v47 = vcombine.low %v65_v42, %v66_v43  ;;  %v347_v50 = vld [vmem:[%s852_s2 + $0x70] sm:$0xff]  ;;  %v348_v53 = vld [vmem:[%s852_s2 + $0x78] sm:$0xff]  ;;  %v68_v55 = vunpack.c.l.s8.bf16 %v52_v49  ;;  %v69_v56 = vunpack.c.l.s8.bf16 %v53_v51  ;;  %v70_v57 = vunpack.c.l.s8.bf16 %v54_v52 }
   0xe   :  { %v55_v60 = vld [vmem:[%s851_s0 + $0x1c] sm:$0x3]  ;;  %v56_v61 = vld [vmem:[%s851_s0 + $0x1e] sm:$0x3] }
   0xf   :  { %603 = vmatpush3.bf16.msra.mxu0 %v656_v4  ;;  %v559_v58 = vcombine.low %v67_v54, %v68_v55  ;;  %v560_v59 = vcombine.low %v69_v56, %v70_v57  ;;  %v71_v62 = vunpack.c.l.s8.bf16 %v55_v60  ;;  %v72_v63 = vunpack.c.l.s8.bf16 %v56_v61 }
  0x10   :  { %604 = vmatprep.subr.bf16.mxu0 %v657_v10  ;;  %402 = vperm.xlu1 %652, %v340_v22  }
  0x11   :  { %397 = vperm.xlu0 %651, %v339_v21   ;;  %v561_v0 = vcombine.low %v71_v62, %v72_v63 }
  0x13   :  { %605 = vmatpush3.bf16.msra.mxu0 %v657_v10  ;;  %v819_v10 = vld [vmem:[%s853_s3] ss:$0 sm:$0xff] }
  0x14   :  { %606 = vmatprep.subr.bf16.mxu0 %v658_v15  ;;  %412 = vperm.xlu1 %652, %v342_v31  }
  0x15   :  { %407 = vperm.xlu0 %651, %v341_v30  }
  0x17   :  { %607 = vmatpush3.bf16.msra.mxu0 %v658_v15 }
  0x18   :  { %608 = vmatprep.subr.bf16.mxu0 %v659_v18  ;;  %422 = vperm.xlu1 %652, %v344_v39  }
  0x19   :  { %417 = vperm.xlu0 %651, %v343_v36  }
  0x1b   :  { %609 = vmatpush3.bf16.msra.mxu0 %v659_v18 }
  0x1c   :  { %610 = vmatprep.subr.bf16.mxu0 %v660_v23  ;;  %432 = vperm.xlu1 %652, %v346_v45  }
  0x1d   :  { %427 = vperm.xlu0 %651, %v345_v44  }
  0x1f   :  { %611 = vmatpush3.bf16.msra.mxu0 %v660_v23 }
  0x20   :  { %442 = vperm.xlu1 %652, %v348_v53  }
  0x21   :  { %437 = vperm.xlu0 %651, %v347_v50  }
  0x22   :  { %613 = vmatmul.mubr.bf16.vlgmr.msra.gmra.mrb[0].mxu0 %v555_v32 }
  0x23   :  { %616 = vmatprep.mubr.bf16.mxu0 %v556_v33 }
  0x2a   :  { %617 = vmatmul.mubr.bf16.gmra.mrb[4].mxu0 %v557_v46 }
  0x2b   :  { %620 = vmatprep.mubr.bf16.mxu0 %v558_v47 }
  0x32   :  { %621 = vmatmul.mubr.bf16.gmra.mrb[8].mxu0 %v559_v58 }
  0x33   :  { %624 = vmatprep.mubr.bf16.mxu0 %v560_v59 }
  0x3a   :  { %625 = vmatmul.mubr.bf16.gmra.mrb[12].mxu0 %v561_v0 }
  0x83   :  { %v378_v3 = vpop.permute.xlu1 %377 }
  0x84   :  { %v368_v2 = vpop.permute.xlu0 %367 }
  0x87   :  { %v383_v5 = vpop.permute.xlu1 %382 }
  0x88   :  { %v373_v4 = vpop.permute.xlu0 %372 }
  0x8b   :  { %v393_v7 = vpop.permute.xlu1 %392 }
  0x8c   :  { %v388_v6 = vpop.permute.xlu0 %387 }
  0x8f   :  { %v403_v13 = vpop.permute.xlu1 %402 }
  0x90   :  { %v398_v8 = vpop.permute.xlu0 %397 }
  0x93   :  { %v413_v26 = vpop.permute.xlu1 %412 }
  0x94   :  { %v408_v22 = vpop.permute.xlu0 %407 }
  0x97   :  { %v423_v43 = vpop.permute.xlu1 %422 }
  0x98   :  { %v418_v39 = vpop.permute.xlu0 %417 }
  0x9b   :  { %v433_v60 = vpop.permute.xlu1 %432 }
  0x9c   :  { %v428_v53 = vpop.permute.xlu0 %427 }
  0xf5   :  { %v614_v9 = vpop.f32.mrb[0].mxu0 }
  0xf6   :  { %v447_v11 = vmul.f32 %v614_v9, %v378_v3  ;;  %v235_v12 = vpop.f32.mrb[1].mxu0 }
  0xf7   :  { %v445_v14 = vmul.f32 %v368_v2, %v235_v12  ;;  %v615_v15 = vpop.f32.mrb[2].mxu0  ;;  %v443_v12 = vpop.permute.xlu1 %442 }
  0xf8   :  { %v470_v16 = vadd.f32 %v819_v10, %v447_v11  ;;  %v448_v17 = vmul.f32 %v615_v15, %v383_v5  ;;  %v238_v18 = vpop.f32.mrb[3].mxu0 }
  0xf9   :  { %v468_v19 = vadd.f32 %v819_v10, %v445_v14  ;;  %v446_v20 = vmul.f32 %v373_v4, %v238_v18  ;;  %v438_v4 = vpop.permute.xlu0 %437 }
  0xfa   :  { %v471_v21 = vadd.f32 %v819_v10, %v448_v17  ;;  %v486_v24 = vmax.f32 %v470_v16, 0.0 }
  0xfb   :  { %v469_v23 = vadd.f32 %v819_v10, %v446_v20  ;;  %v484_v27 = vmax.f32 %v468_v19, 0.0 }
  0xfc   :  { %v487_v25 = vmax.f32 %v471_v21, 0.0 }
  0xfd   :  { %v485_v28 = vmax.f32 %v469_v23, 0.0  ;;  %v618_v29 = vpop.f32.mrb[4].mxu0 }
  0xfe   :  { %v451_v30 = vmul.f32 %v618_v29, %v398_v8  ;;  %v251_v31 = vpop.f32.mrb[5].mxu0  ;;  %v501_v32 = vpack.c.bf16 %v487_v25, %v486_v24  ;;  %v508_v29 = vld [vmem:[%s854_s4] sm:$0x1] }
  0xff   :  { %v449_v33 = vmul.f32 %v388_v6, %v251_v31  ;;  %v619_v34 = vpop.f32.mrb[6].mxu0  ;;  %v500_v35 = vpack.c.bf16 %v485_v28, %v484_v27 }
 0x100   :  { %v474_v36 = vadd.f32 %v819_v10, %v451_v30  ;;  %v452_v37 = vmul.f32 %v619_v34, %v403_v13  ;;  %v254_v38 = vpop.f32.mrb[7].mxu0 }
 0x101   :  { %v472_v40 = vadd.f32 %v819_v10, %v449_v33  ;;  %v450_v41 = vmul.f32 %v393_v7, %v254_v38  ;;  %629 = vmatpush3.bf16.msra.mxu1 %v500_v35 }
 0x102   :  { %v475_v42 = vadd.f32 %v819_v10, %v452_v37  ;;  %630 = vmatprep.subr.bf16.mxu1 %v662_v1  ;;  %v490_v45 = vmax.f32 %v474_v36, 0.0 }
 0x103   :  { %v473_v44 = vadd.f32 %v819_v10, %v450_v41  ;;  %v488_v47 = vmax.f32 %v472_v40, 0.0 }
 0x104   :  { %v491_v46 = vmax.f32 %v475_v42, 0.0 }
 0x105   :  { %v489_v48 = vmax.f32 %v473_v44, 0.0  ;;  %v622_v49 = vpop.f32.mrb[8].mxu0  ;;  %631 = vmatpush3.bf16.msra.mxu1 %v501_v32 }
 0x106   :  { %v455_v50 = vmul.f32 %v622_v49, %v418_v39  ;;  %v267_v51 = vpop.f32.mrb[9].mxu0  ;;  %632 = vmatprep.subr.bf16.mxu1 %v662_v1  ;;  %v503_v52 = vpack.c.bf16 %v491_v46, %v490_v45 }
 0x107   :  { %v453_v54 = vmul.f32 %v408_v22, %v267_v51  ;;  %v623_v55 = vpop.f32.mrb[10].mxu0  ;;  %v502_v56 = vpack.c.bf16 %v489_v48, %v488_v47 }
 0x108   :  { %v478_v57 = vadd.f32 %v819_v10, %v455_v50  ;;  %v456_v58 = vmul.f32 %v623_v55, %v423_v43  ;;  %v270_v59 = vpop.f32.mrb[11].mxu0 }
 0x109   :  { %v476_v61 = vadd.f32 %v819_v10, %v453_v54  ;;  %v454_v62 = vmul.f32 %v413_v26, %v270_v59  ;;  %633 = vmatpush3.bf16.msra.mxu1 %v502_v56 }
 0x10a   :  { %v479_v63 = vadd.f32 %v819_v10, %v456_v58  ;;  %634 = vmatprep.subr.bf16.mxu1 %v662_v1  ;;  %v494_v2 = vmax.f32 %v478_v57, 0.0 }
 0x10b   :  { %v477_v0 = vadd.f32 %v819_v10, %v454_v62  ;;  %v492_v5 = vmax.f32 %v476_v61, 0.0 }
 0x10c   :  { %v495_v3 = vmax.f32 %v479_v63, 0.0 }
 0x10d   :  { %v493_v6 = vmax.f32 %v477_v0, 0.0  ;;  %v626_v7 = vpop.f32.mrb[12].mxu0  ;;  %635 = vmatpush3.bf16.msra.mxu1 %v503_v52 }
 0x10e   :  { %v459_v8 = vmul.f32 %v626_v7, %v438_v4  ;;  %v283_v9 = vpop.f32.mrb[13].mxu0  ;;  %636 = vmatprep.subr.bf16.mxu1 %v662_v1  ;;  %v505_v11 = vpack.c.bf16 %v495_v3, %v494_v2 }
 0x10f   :  { %v457_v13 = vmul.f32 %v428_v53, %v283_v9  ;;  %v627_v14 = vpop.f32.mrb[14].mxu0  ;;  %v504_v15 = vpack.c.bf16 %v493_v6, %v492_v5 }
 0x110   :  { %v482_v16 = vadd.f32 %v819_v10, %v459_v8  ;;  %v460_v17 = vmul.f32 %v627_v14, %v443_v12  ;;  %v286_v18 = vpop.f32.mrb[15].mxu0 }
 0x111   :  { %v480_v19 = vadd.f32 %v819_v10, %v457_v13  ;;  %v458_v20 = vmul.f32 %v433_v60, %v286_v18  ;;  %637 = vmatpush3.bf16.msra.mxu1 %v504_v15 }
 0x112   :  { %v483_v21 = vadd.f32 %v819_v10, %v460_v17  ;;  %638 = vmatprep.subr.bf16.mxu1 %v662_v1  ;;  %v498_v23 = vmax.f32 %v482_v16, 0.0 }
 0x113   :  { %v481_v22 = vadd.f32 %v819_v10, %v458_v20  ;;  %v496_v25 = vmax.f32 %v480_v19, 0.0 }
 0x114   :  { %v499_v24 = vmax.f32 %v483_v21, 0.0 }
 0x115   :  { %v497_v26 = vmax.f32 %v481_v22, 0.0  ;;  %639 = vmatpush3.bf16.msra.mxu1 %v505_v11 }
 0x116   :  { %640 = vmatprep.subr.bf16.mxu1 %v662_v1  ;;  %v507_v27 = vpack.c.bf16 %v499_v24, %v498_v23 }
 0x117   :  { %v506_v28 = vpack.c.bf16 %v497_v26, %v496_v25 }
 0x119   :  { %641 = vmatpush3.bf16.msra.mxu1 %v506_v28 }
 0x11a   :  { %642 = vmatprep.subr.bf16.mxu1 %v662_v1 }
 0x11d   :  { %643 = vmatpush3.bf16.msra.mxu1 %v507_v27 }
 0x120   :  { %645 = vmatmul.mubr.bf16.vlgmr.msra.gmra.mrb[0].mxu1 %v508_v29 }
 0x1f3   :  { %v543_v30 = vpop.f32.mrb[0].mxu1 }
 0x1f4   :  { %549 = vst [vmem:[%s855_s5] sm:$0x3] %v543_v30  ;;  %v646_v10 = vpop.f32.mrb[1].mxu1 }
 0x1f5   :  { %v546_v31 = vpop.f32.mrb[2].mxu1 }
 0x1f6   :  { %v647_v32 = vpop.f32.mrb[3].mxu1 }

// kernel: _lambda_.5
= control target key start
LH: loop header
LB: loop body
LE: loop exit
PB: predicated region body
PF: predicated region fallthrough
CT: control target
= control target key end

     0   :  { %v721_v0 = vmov 0   ;;  %v722_v2 = vmov 0.0|0.0   ;;  %vm723_vm0 = vmmov 0   ;;  %v724_v13 = vmov 0.0   ;;  %s991_s1 = inlined_call_operand.vmem [shape: f32[2,1], index: 1, kind: input, shape index: {}]   ;;  %s992_s2 = inlined_call_operand.vmem [shape: f32[128,32], index: 2, kind: input, shape index: {}]   ;;  %s993_s4 = inlined_call_operand.vmem [shape: f32[128,32], index: 4, kind: input, shape index: {}]   ;;  %s994_s6 = inlined_call_operand.vmem [shape: f32[128,32], index: 6, kind: input, shape index: {}]   ;;  %s995_s0 = inlined_call_operand.vmem [shape: f32[1,2,128], index: 0, kind: input, shape index: {}]   ;;  %s996_s8 = inlined_call_operand.vmem [shape: f32[32,8], index: 8, kind: input, shape index: {}]   ;;  %s997_s3 = inlined_call_operand.vmem [shape: f32[1,32], index: 3, kind: input, shape index: {}]   ;;  %s998_s5 = inlined_call_operand.vmem [shape: f32[1,32], index: 5, kind: input, shape index: {}]   ;;  %s999_s7 = inlined_call_operand.vmem [shape: f32[1,32], index: 7, kind: input, shape index: {}]   ;;  %s1000_s9 = inlined_call_operand.vmem [shape: f32[1,8], index: 9, kind: input, shape index: {}]   ;;  %s1001_s10 = inlined_call_operand.vmem [shape: f32[2,8], index: 10, kind: output, shape index: {}]  }
   0x1   :  { %704 = vset.pattern.permute.xlu0 %v721_v0  ;;  %v37_v1 = vld [vmem:[%s991_s1] sm:$0x3]  ;;  %622 = vmatprep.subr.bf16.mxu0 %v722_v2  ;;  %v45_v4 = vld [vmem:[%s992_s2 + $0x8] sm:$0xff]  ;;  %v46_v8 = vld [vmem:[%s992_s2 + $0x10] sm:$0xff]  ;;  %vm350_vm1 = vcmask 261120   ;;  %vm437_vm3 = vcmask 58368  }
   0x2   :  { %v44_v3 = vld [vmem:[%s992_s2] sm:$0xff]  ;;  %40 = vperm.xlu0 %704, %v37_v1   ;;  %646 = vmatprep.subr.bf16.mxu1 %v722_v2  ;;  %v144_v7 = vld [vmem:[%s993_s4 + $0x8] sm:$0xff]  ;;  %v47_v10 = vld [vmem:[%s992_s2 + $0x18] sm:$0xff] }
   0x3   :  { %v623_v5 = vpack.c.bf16 %v45_v4, %v44_v3  ;;  %v143_v6 = vld [vmem:[%s993_s4] sm:$0xff]  ;;  %v145_v11 = vld [vmem:[%s993_s4 + $0x10] sm:$0xff]  ;;  %v146_v12 = vld [vmem:[%s993_s4 + $0x18] sm:$0xff]  ;;  %538 = vmatprep.mubr.msk.f32.mxu0 %vm723_vm0, %v724_v13  ;;  %573 = vmatprep.mubr.msk.f32.mxu1 %vm723_vm0, %v724_v13  ;;  %v626_v14 = vpack.c.bf16 %v47_v10, %v46_v8 }
   0x4   :  { %v647_v9 = vpack.c.bf16 %v144_v7, %v143_v6  ;;  %v650_v15 = vpack.c.bf16 %v146_v12, %v145_v11  ;;  %v48_v16 = vld [vmem:[%s992_s2 + $0x20] sm:$0xff]  ;;  %v49_v17 = vld [vmem:[%s992_s2 + $0x28] sm:$0xff]  ;;  %v50_v22 = vld [vmem:[%s992_s2 + $0x30] sm:$0xff] }
   0x5   :  { %624 = vmatpush3.bf16.msra.mxu0 %v623_v5  ;;  %v147_v18 = vld [vmem:[%s993_s4 + $0x20] sm:$0xff]  ;;  %v148_v19 = vld [vmem:[%s993_s4 + $0x28] sm:$0xff]  ;;  %v629_v20 = vpack.c.bf16 %v49_v17, %v48_v16  ;;  %v51_v23 = vld [vmem:[%s992_s2 + $0x38] sm:$0xff] }
   0x6   :  { %648 = vmatpush3.bf16.msra.mxu1 %v647_v9  ;;  %625 = vmatprep.subr.bf16.mxu0 %v722_v2  ;;  %v653_v21 = vpack.c.bf16 %v148_v19, %v147_v18  ;;  %v149_v24 = vld [vmem:[%s993_s4 + $0x30] sm:$0xff]  ;;  %v150_v25 = vld [vmem:[%s993_s4 + $0x38] sm:$0xff]  ;;  %v632_v26 = vpack.c.bf16 %v51_v23, %v50_v22  ;;  %v52_v28 = vld [vmem:[%s992_s2 + $0x40] sm:$0xff] }
   0x7   :  { %649 = vmatprep.subr.bf16.mxu1 %v722_v2  ;;  %v656_v27 = vpack.c.bf16 %v150_v25, %v149_v24  ;;  %v53_v29 = vld [vmem:[%s992_s2 + $0x48] sm:$0xff]  ;;  %v151_v30 = vld [vmem:[%s993_s4 + $0x40] sm:$0xff]  ;;  %v54_v34 = vld [vmem:[%s992_s2 + $0x50] sm:$0xff] }
   0x8   :  { %v152_v31 = vld [vmem:[%s993_s4 + $0x48] sm:$0xff]  ;;  %v635_v32 = vpack.c.bf16 %v53_v29, %v52_v28  ;;  %v55_v35 = vld [vmem:[%s992_s2 + $0x58] sm:$0xff]  ;;  %v153_v36 = vld [vmem:[%s993_s4 + $0x50] sm:$0xff] }
   0x9   :  { %627 = vmatpush3.bf16.msra.mxu0 %v626_v14  ;;  %v659_v33 = vpack.c.bf16 %v152_v31, %v151_v30  ;;  %v154_v37 = vld [vmem:[%s993_s4 + $0x58] sm:$0xff]  ;;  %v638_v38 = vpack.c.bf16 %v55_v35, %v54_v34  ;;  %v56_v40 = vld [vmem:[%s992_s2 + $0x60] sm:$0xff]  ;;  %v57_v41 = vld [vmem:[%s992_s2 + $0x68] sm:$0xff] }
   0xa   :  { %651 = vmatpush3.bf16.msra.mxu1 %v650_v15  ;;  %628 = vmatprep.subr.bf16.mxu0 %v722_v2  ;;  %v662_v39 = vpack.c.bf16 %v154_v37, %v153_v36  ;;  %v155_v42 = vld [vmem:[%s993_s4 + $0x60] sm:$0xff]  ;;  %v156_v43 = vld [vmem:[%s993_s4 + $0x68] sm:$0xff]  ;;  %v641_v44 = vpack.c.bf16 %v57_v41, %v56_v40  ;;  %v58_v46 = vld [vmem:[%s992_s2 + $0x70] sm:$0xff] }
   0xb   :  { %652 = vmatprep.subr.bf16.mxu1 %v722_v2  ;;  %v665_v45 = vpack.c.bf16 %v156_v43, %v155_v42  ;;  %v59_v47 = vld [vmem:[%s992_s2 + $0x78] sm:$0xff]  ;;  %v157_v48 = vld [vmem:[%s993_s4 + $0x70] sm:$0xff]  ;;  %v237_v52 = vld [vmem:[%s994_s6] sm:$0xff] }
   0xc   :  { %v158_v49 = vld [vmem:[%s993_s4 + $0x78] sm:$0xff]  ;;  %v644_v50 = vpack.c.bf16 %v59_v47, %v58_v46  ;;  %v238_v53 = vld [vmem:[%s994_s6 + $0x8] sm:$0xff]  ;;  %v35_v54 = vld [vmem:[%s995_s0] sm:$0x3] }
   0xd   :  { %630 = vmatpush3.bf16.msra.mxu0 %v629_v20  ;;  %v668_v51 = vpack.c.bf16 %v158_v49, %v157_v48  ;;  %v671_v56 = vpack.c.bf16 %v238_v53, %v237_v52  ;;  %v239_v58 = vld [vmem:[%s994_s6 + $0x10] sm:$0xff]  ;;  %v240_v59 = vld [vmem:[%s994_s6 + $0x18] sm:$0xff]  ;;  %v241_v61 = vld [vmem:[%s994_s6 + $0x20] sm:$0xff] }
   0xe   :  { %654 = vmatpush3.bf16.msra.mxu1 %v653_v21  ;;  %631 = vmatprep.subr.bf16.mxu0 %v722_v2  ;;  %v674_v60 = vpack.c.bf16 %v240_v59, %v239_v58  ;;  %v242_v62 = vld [vmem:[%s994_s6 + $0x28] sm:$0xff]  ;;  %v243_v0 = vld [vmem:[%s994_s6 + $0x30] sm:$0xff]  ;;  %v244_v1 = vld [vmem:[%s994_s6 + $0x38] sm:$0xff] }
   0xf   :  { %655 = vmatprep.subr.bf16.mxu1 %v722_v2  ;;  %v677_v63 = vpack.c.bf16 %v242_v62, %v241_v61  ;;  %v680_v3 = vpack.c.bf16 %v244_v1, %v243_v0  ;;  %v245_v4 = vld [vmem:[%s994_s6 + $0x40] sm:$0xff]  ;;  %v246_v5 = vld [vmem:[%s994_s6 + $0x48] sm:$0xff]  ;;  %v247_v7 = vld [vmem:[%s994_s6 + $0x50] sm:$0xff] }
  0x10   :  { %v683_v6 = vpack.c.bf16 %v246_v5, %v245_v4  ;;  %v248_v8 = vld [vmem:[%s994_s6 + $0x58] sm:$0xff]  ;;  %v249_v10 = vld [vmem:[%s994_s6 + $0x60] sm:$0xff]  ;;  %v250_v11 = vld [vmem:[%s994_s6 + $0x68] sm:$0xff] }
  0x11   :  { %633 = vmatpush3.bf16.msra.mxu0 %v632_v26  ;;  %v686_v9 = vpack.c.bf16 %v248_v8, %v247_v7  ;;  %v689_v12 = vpack.c.bf16 %v250_v11, %v249_v10  ;;  %v252_v14 = vld [vmem:[%s994_s6 + $0x78] sm:$0xff]  ;;  %v339_v16 = vld [vmem:[%s996_s8] sm:$0xff]  ;;  %v340_v17 = vld [vmem:[%s996_s8 + $0x8] sm:$0xff] }
  0x12   :  { %657 = vmatpush3.bf16.msra.mxu1 %v656_v27  ;;  %634 = vmatprep.subr.bf16.mxu0 %v722_v2  ;;  %v341_v18 = vld [vmem:[%s996_s8 + $0x10] sm:$0xff]  ;;  %v695_v19 = vpack.c.bf16 %v340_v17, %v339_v16  ;;  %v342_v20 = vld [vmem:[%s996_s8 + $0x18] sm:$0xff]  ;;  %v443_v22 = vld [vmem:[%s997_s3] ss:$0 sm:$0xff] }
  0x13   :  { %658 = vmatprep.subr.bf16.mxu1 %v722_v2  ;;  %v698_v21 = vpack.c.bf16 %v342_v20, %v341_v18  ;;  %v445_v29 = vld [vmem:[%s998_s5] ss:$0 sm:$0xff] }
  0x14   :  { %v446_v35 = vld [vmem:[%s999_s7] ss:$0 sm:$0xff] }
  0x15   :  { %636 = vmatpush3.bf16.msra.mxu0 %v635_v32 }
  0x16   :  { %660 = vmatpush3.bf16.msra.mxu1 %v659_v33  ;;  %637 = vmatprep.subr.bf16.mxu0 %v722_v2 }
  0x17   :  { %661 = vmatprep.subr.bf16.mxu1 %v722_v2 }
  0x19   :  { %639 = vmatpush3.bf16.msra.mxu0 %v638_v38 }
  0x1a   :  { %663 = vmatpush3.bf16.msra.mxu1 %v662_v39  ;;  %640 = vmatprep.subr.bf16.mxu0 %v722_v2 }
  0x1b   :  { %664 = vmatprep.subr.bf16.mxu1 %v722_v2 }
  0x1d   :  { %642 = vmatpush3.bf16.msra.mxu0 %v641_v44 }
  0x1e   :  { %666 = vmatpush3.bf16.msra.mxu1 %v665_v45  ;;  %643 = vmatprep.subr.bf16.mxu0 %v722_v2  ;;  %v448_v45 = vld [vmem:[%s1000_s9] ss:$0 sm:$0xff] }
  0x1f   :  { %667 = vmatprep.subr.bf16.mxu1 %v722_v2 }
  0x21   :  { %645 = vmatpush3.bf16.msra.mxu0 %v644_v50 }
  0x22   :  { %669 = vmatpush3.bf16.msra.mxu1 %v668_v51  ;;  %670 = vmatprep.subr.bf16.mxu0 %v722_v2 }
  0x23   :  { %694 = vmatprep.subr.bf16.mxu1 %v722_v2 }
  0x81   :  { %v41_v55 = vpop.permute.xlu0 %40 }
  0x82   :  { %v43_v57 = vmul.f32 %v41_v55, %v35_v54  ;;  %v424_v54 = vlaneseq }
  0x84   :  { %539 = vmatmul.mubr.f32.vlgmr.msra.gmra.mrb[0].mxu0 %v43_v57  ;;  %574 = vmatmul.mubr.f32.vlgmr.msra.gmra.mrb[0].mxu1 %v43_v57  ;;  %v425_v55 = vand.u32 127, %v424_v54 }
  0x85   :  { %672 = vmatpush3.bf16.msra.mxu0 %v671_v56  ;;  %608 = vmatprep.mubr.msk.f32.mxu0 %vm723_vm0, %v724_v13 }
  0x86   :  { %673 = vmatprep.subr.bf16.mxu0 %v722_v2  ;;  %619 = vmatprep.mubr.msk.f32.mxu1 %vm723_vm0, %v724_v13  ;;  %v251_v13 = vld [vmem:[%s994_s6 + $0x70] sm:$0xff]  ;;  %vm435_vm2 = vcmp.lt.s32.totalorder %v425_v55, 4 }
  0x87   :  { %v692_v15 = vpack.c.bf16 %v252_v14, %v251_v13  ;;  %696 = vmatpush3.bf16.msra.mxu1 %v695_v19 }
  0x88   :  { %697 = vmatprep.subr.bf16.mxu1 %v722_v2 }
  0x89   :  { %675 = vmatpush3.bf16.msra.mxu0 %v674_v60 }
  0x8a   :  { %676 = vmatprep.subr.bf16.mxu0 %v722_v2 }
  0x8b   :  { %699 = vmatpush3.bf16.msra.mxu1 %v698_v21 }
  0x8d   :  { %678 = vmatpush3.bf16.msra.mxu0 %v677_v63 }
  0x8e   :  { %679 = vmatprep.subr.bf16.mxu0 %v722_v2 }
  0x91   :  { %681 = vmatpush3.bf16.msra.mxu0 %v680_v3 }
  0x92   :  { %682 = vmatprep.subr.bf16.mxu0 %v722_v2 }
  0x95   :  { %684 = vmatpush3.bf16.msra.mxu0 %v683_v6 }
  0x96   :  { %685 = vmatprep.subr.bf16.mxu0 %v722_v2 }
  0x99   :  { %687 = vmatpush3.bf16.msra.mxu0 %v686_v9 }
  0x9a   :  { %688 = vmatprep.subr.bf16.mxu0 %v722_v2 }
  0x9d   :  { %690 = vmatpush3.bf16.msra.mxu0 %v689_v12 }
  0x9e   :  { %691 = vmatprep.subr.bf16.mxu0 %v722_v2 }
  0xa1   :  { %693 = vmatpush3.bf16.msra.mxu0 %v692_v15 }
  0xa4   :  { %609 = vmatmul.mubr.f32.vlgmr.msra.gmra.mrb[2].mxu0 %v43_v57 }
 0x157   :  { %v133_v23 = vpop.f32.mrb[0].mxu0  ;;  %v232_v24 = vpop.f32.mrb[0].mxu1 }
 0x158   :  { %v134_v25 = vadd.f32 %v443_v22, %v133_v23  ;;  %v540_v26 = vpop.f32.mrb[1].mxu0  ;;  %v575_v27 = vpop.f32.mrb[1].mxu1  ;;  %v233_v30 = vadd.f32 %v445_v29, %v232_v24 }
 0x15a   :  { %v444_v28 = vmul.f32 -1.442695, %v134_v25 }
 0x15c   :  { %705 = vpow2.f32 %v444_v28 }
 0x15d   :  { %707 = vtanh.f32 %v233_v30 }
 0x166   :  { %v706_v31 = vpop.eup %705 }
 0x167   :  { %v140_v32 = vadd.f32 1.0, %v706_v31  ;;  %v708_v2 = vpop.eup %707 }
 0x169   :  { %709 = vrcp.f32 %v140_v32 }
 0x173   :  { %v710_v33 = vpop.eup %709 }
 0x174   :  { %v336_v34 = vmul.f32 %v710_v33, %v708_v2 }
 0x177   :  { %v326_v36 = vpop.f32.mrb[2].mxu0 }
 0x178   :  { %v327_v37 = vadd.f32 %v446_v35, %v326_v36  ;;  %v610_v38 = vpop.f32.mrb[3].mxu0 }
 0x17a   :  { %v447_v39 = vmul.f32 -1.442695, %v327_v37 }
 0x17c   :  { %711 = vpow2.f32 %v447_v39 }
 0x17d   :  { %713 = vtanh.f32 %v336_v34 }
 0x186   :  { %v712_v40 = vpop.eup %711 }
 0x187   :  { %v333_v41 = vadd.f32 1.0, %v712_v40  ;;  %v714_v42 = vpop.eup %713 }
 0x189   :  { %715 = vrcp.f32 %v333_v41 }
 0x193   :  { %v716_v43 = vpop.eup %715 }
 0x194   :  { %v338_v44 = vmul.f32 %v716_v43, %v714_v42 }
 0x196   :  { %620 = vmatmul.mubr.msk.f32.vlgmr.msra.gmra.mrb[2].mxu1 %vm350_vm1, %v338_v44 }
 0x269   :  { %v420_v46 = vpop.f32.mrb[2].mxu1 }
 0x26a   :  { %v421_v47 = vadd.f32 %v448_v45, %v420_v46  ;;  %v621_v48 = vpop.f32.mrb[3].mxu1 }
 0x26c   :  { %v427_v49 = vand.u32 2147483647, %v421_v47  ;;  %v426_v57 = vmax.f32 %v421_v47, 0.0 }
 0x26e   :  { %v428_v50 = vsub.f32 0.0, %v427_v49 }
 0x270   :  { %v429_v51 = vmul.f32 1.442695, %v428_v50 }
 0x272   :  { %717 = vpow2.f32 %v429_v51 }
 0x27c   :  { %v718_v52 = vpop.eup %717 }
 0x27d   :  { %v431_v53 = vadd.f32 1.0, %v718_v52 }
 0x27f   :  { %719 = vlog2.f32 %v431_v53 }
 0x289   :  { %v720_v56 = vpop.eup %719 }
 0x28a   :  { %v433_v58 = vmul.f32 0.6931472, %v720_v56 }
 0x28c   :  { %v434_v59 = vadd.f32 %v433_v58, %v426_v57 }
 0x28e   :  { %v436_v60 = vsel %vm435_vm2, %v421_v47, %v434_v59 }
 0x28f   :  { %438 = vst.msk [vmem:[%s1001_s10] sm:$0x3] %vm437_vm3, %v436_v60 }

// kernel: _lambda_.3
= control target key start
LH: loop header
LB: loop body
LE: loop exit
PB: predicated region body
PF: predicated region fallthrough
CT: control target
= control target key end

     0   :  { %v988_v1 = vmov 0   ;;  %s1212_s1 = inlined_call_operand.vmem [shape: bf16[128,128], index: 1, kind: input, shape index: {}]   ;;  %s1213_s0 = inlined_call_operand.vmem [shape: s8[128,128], index: 0, kind: input, shape index: {}]   ;;  %s1214_s2 = inlined_call_operand.vmem [shape: f32[128,1], index: 2, kind: input, shape index: {}]   ;;  %s1215_s4 = inlined_call_operand.vmem [shape: bf16[128,128], index: 4, kind: input, shape index: {}]   ;;  %s1216_s3 = inlined_call_operand.vmem [shape: f32[1,128], index: 3, kind: input, shape index: {}]   ;;  %s1217_s5 = inlined_call_operand.vmem [shape: bf16[128,128], index: 5, kind: output, shape index: {}]  }
   0x1   :  { %v972_v0 = vld [vmem:[%s1212_s1] sm:$0xff]   ;;  %970 = vset.pattern.permute.xlu0 %v988_v1  ;;  %971 = vset.pattern.permute.xlu1 %v988_v1  ;;  %v973_v2 = vld [vmem:[%s1212_s1 + $0x8] sm:$0xff]   ;;  %v974_v3 = vld [vmem:[%s1212_s1 + $0x10] sm:$0xff]  }
   0x2   :  { %905 = vmatprep.subr.bf16.mxu0 %v972_v0  ;;  %v975_v4 = vld [vmem:[%s1212_s1 + $0x18] sm:$0xff]   ;;  %v41_v5 = vld [vmem:[%s1213_s0] sm:$0x3]  ;;  %v42_v6 = vld [vmem:[%s1213_s0 + $0x2] sm:$0x3] }
   0x3   :  { %906 = vmatpush3.bf16.msra.mxu0 %v972_v0  ;;  %v57_v7 = vunpack.c.l.s8.bf16 %v41_v5  ;;  %v58_v8 = vunpack.c.l.s8.bf16 %v42_v6  ;;  %v976_v10 = vld [vmem:[%s1212_s1 + $0x20] sm:$0xff]   ;;  %v335_v12 = vld [vmem:[%s1214_s2 + $0x10] sm:$0xff]  ;;  %v334_v13 = vld [vmem:[%s1214_s2 + $0x8] sm:$0xff] }
   0x4   :  { %907 = vmatprep.subr.bf16.mxu0 %v973_v2  ;;  %v333_v11 = vld [vmem:[%s1214_s2] sm:$0xff]  ;;  %377 = vperm.xlu1 %971, %v335_v12   ;;  %v336_v14 = vld [vmem:[%s1214_s2 + $0x18] sm:$0xff]  ;;  %v977_v15 = vld [vmem:[%s1212_s1 + $0x28] sm:$0xff]  }
   0x5   :  { %v769_v9 = vcombine.low %v57_v7, %v58_v8  ;;  %367 = vperm.xlu0 %970, %v333_v11   ;;  %v337_v16 = vld [vmem:[%s1214_s2 + $0x20] sm:$0xff]  ;;  %v338_v17 = vld [vmem:[%s1214_s2 + $0x28] sm:$0xff]  ;;  %v978_v18 = vld [vmem:[%s1212_s1 + $0x30] sm:$0xff]  }
   0x6   :  { %v43_v19 = vld [vmem:[%s1213_s0 + $0x4] sm:$0x3]  ;;  %v44_v20 = vld [vmem:[%s1213_s0 + $0x6] sm:$0x3]  ;;  %v339_v21 = vld [vmem:[%s1214_s2 + $0x30] sm:$0xff] }
   0x7   :  { %908 = vmatpush3.bf16.msra.mxu0 %v973_v2  ;;  %921 = vmatprep.mubr.bf16.mxu0 %v769_v9  ;;  %v340_v22 = vld [vmem:[%s1214_s2 + $0x38] sm:$0xff]  ;;  %v45_v24 = vld [vmem:[%s1213_s0 + $0x8] sm:$0x3]  ;;  %v46_v25 = vld [vmem:[%s1213_s0 + $0xa] sm:$0x3]  ;;  %v59_v30 = vunpack.c.l.s8.bf16 %v43_v19  ;;  %v60_v31 = vunpack.c.l.s8.bf16 %v44_v20 }
   0x8   :  { %909 = vmatprep.subr.bf16.mxu0 %v974_v3  ;;  %382 = vperm.xlu1 %971, %v336_v14   ;;  %v979_v23 = vld [vmem:[%s1212_s1 + $0x38] sm:$0xff]   ;;  %v980_v26 = vld [vmem:[%s1215_s4] sm:$0xff]   ;;  %v342_v28 = vld [vmem:[%s1214_s2 + $0x48] sm:$0xff]  ;;  %v61_v32 = vunpack.c.l.s8.bf16 %v45_v24  ;;  %v62_v33 = vunpack.c.l.s8.bf16 %v46_v25 }
   0x9   :  { %372 = vperm.xlu0 %970, %v334_v13   ;;  %937 = vmatprep.subr.bf16.mxu1 %v980_v26  ;;  %v341_v27 = vld [vmem:[%s1214_s2 + $0x40] sm:$0xff]  ;;  %v981_v29 = vld [vmem:[%s1215_s4 + $0x8] sm:$0xff]   ;;  %v982_v34 = vld [vmem:[%s1215_s4 + $0x10] sm:$0xff]   ;;  %v770_v35 = vcombine.low %v59_v30, %v60_v31 }
   0xa   :  { %938 = vmatpush3.bf16.msra.mxu1 %v980_v26  ;;  %v771_v36 = vcombine.low %v61_v32, %v62_v33  ;;  %v47_v37 = vld [vmem:[%s1213_s0 + $0xc] sm:$0x3]  ;;  %v48_v38 = vld [vmem:[%s1213_s0 + $0xe] sm:$0x3]  ;;  %v343_v39 = vld [vmem:[%s1214_s2 + $0x50] sm:$0xff] }
   0xb   :  { %910 = vmatpush3.bf16.msra.mxu0 %v974_v3  ;;  %939 = vmatprep.subr.bf16.mxu1 %v981_v29  ;;  %v49_v40 = vld [vmem:[%s1213_s0 + $0x10] sm:$0x3]  ;;  %v50_v41 = vld [vmem:[%s1213_s0 + $0x12] sm:$0x3]  ;;  %v344_v42 = vld [vmem:[%s1214_s2 + $0x58] sm:$0xff]  ;;  %v63_v43 = vunpack.c.l.s8.bf16 %v47_v37  ;;  %v64_v44 = vunpack.c.l.s8.bf16 %v48_v38 }
   0xc   :  { %911 = vmatprep.subr.bf16.mxu0 %v975_v4  ;;  %392 = vperm.xlu1 %971, %v338_v17   ;;  %v983_v45 = vld [vmem:[%s1215_s4 + $0x18] sm:$0xff]   ;;  %v65_v46 = vunpack.c.l.s8.bf16 %v49_v40  ;;  %v66_v47 = vunpack.c.l.s8.bf16 %v50_v41  ;;  %v345_v48 = vld [vmem:[%s1214_s2 + $0x60] sm:$0xff]  ;;  %v346_v49 = vld [vmem:[%s1214_s2 + $0x68] sm:$0xff] }
   0xd   :  { %387 = vperm.xlu0 %970, %v337_v16   ;;  %v772_v50 = vcombine.low %v63_v43, %v64_v44  ;;  %v984_v51 = vld [vmem:[%s1215_s4 + $0x20] sm:$0xff]   ;;  %v51_v53 = vld [vmem:[%s1213_s0 + $0x14] sm:$0x3]  ;;  %v52_v54 = vld [vmem:[%s1213_s0 + $0x16] sm:$0x3] }
   0xe   :  { %940 = vmatpush3.bf16.msra.mxu1 %v981_v29  ;;  %v773_v52 = vcombine.low %v65_v46, %v66_v47  ;;  %v347_v55 = vld [vmem:[%s1214_s2 + $0x70] sm:$0xff]  ;;  %v53_v56 = vld [vmem:[%s1213_s0 + $0x18] sm:$0x3]  ;;  %v54_v57 = vld [vmem:[%s1213_s0 + $0x1a] sm:$0x3]  ;;  %v67_v59 = vunpack.c.l.s8.bf16 %v51_v53  ;;  %v68_v60 = vunpack.c.l.s8.bf16 %v52_v54 }
   0xf   :  { %912 = vmatpush3.bf16.msra.mxu0 %v975_v4  ;;  %941 = vmatprep.subr.bf16.mxu1 %v982_v34  ;;  %v348_v58 = vld [vmem:[%s1214_s2 + $0x78] sm:$0xff]  ;;  %v69_v61 = vunpack.c.l.s8.bf16 %v53_v56  ;;  %v70_v62 = vunpack.c.l.s8.bf16 %v54_v57  ;;  %v985_v6 = vld [vmem:[%s1215_s4 + $0x28] sm:$0xff]   ;;  %v986_v7 = vld [vmem:[%s1215_s4 + $0x30] sm:$0xff]  }
  0x10   :  { %913 = vmatprep.subr.bf16.mxu0 %v976_v10  ;;  %402 = vperm.xlu1 %971, %v340_v22   ;;  %v774_v63 = vcombine.low %v67_v59, %v68_v60  ;;  %v55_v1 = vld [vmem:[%s1213_s0 + $0x1c] sm:$0x3]  ;;  %v56_v2 = vld [vmem:[%s1213_s0 + $0x1e] sm:$0x3]  ;;  %v1166_v17 = vld [vmem:[%s1216_s3] ss:$0 sm:$0xff] }
  0x11   :  { %397 = vperm.xlu0 %970, %v339_v21   ;;  %v775_v0 = vcombine.low %v69_v61, %v70_v62  ;;  %v71_v3 = vunpack.c.l.s8.bf16 %v55_v1  ;;  %v72_v4 = vunpack.c.l.s8.bf16 %v56_v2  ;;  %v987_v8 = vld [vmem:[%s1215_s4 + $0x38] sm:$0xff]  }
  0x12   :  { %942 = vmatpush3.bf16.msra.mxu1 %v982_v34 }
  0x13   :  { %914 = vmatpush3.bf16.msra.mxu0 %v976_v10  ;;  %943 = vmatprep.subr.bf16.mxu1 %v983_v45  ;;  %v776_v5 = vcombine.low %v71_v3, %v72_v4 }
  0x14   :  { %915 = vmatprep.subr.bf16.mxu0 %v977_v15  ;;  %412 = vperm.xlu1 %971, %v342_v28  }
  0x15   :  { %407 = vperm.xlu0 %970, %v341_v27  }
  0x16   :  { %944 = vmatpush3.bf16.msra.mxu1 %v983_v45 }
  0x17   :  { %916 = vmatpush3.bf16.msra.mxu0 %v977_v15  ;;  %945 = vmatprep.subr.bf16.mxu1 %v984_v51 }
  0x18   :  { %917 = vmatprep.subr.bf16.mxu0 %v978_v18  ;;  %422 = vperm.xlu1 %971, %v344_v42  }
  0x19   :  { %417 = vperm.xlu0 %970, %v343_v39  }
  0x1a   :  { %946 = vmatpush3.bf16.msra.mxu1 %v984_v51 }
  0x1b   :  { %918 = vmatpush3.bf16.msra.mxu0 %v978_v18  ;;  %947 = vmatprep.subr.bf16.mxu1 %v985_v6 }
  0x1c   :  { %919 = vmatprep.subr.bf16.mxu0 %v979_v23  ;;  %432 = vperm.xlu1 %971, %v346_v49  }
  0x1d   :  { %427 = vperm.xlu0 %970, %v345_v48  }
  0x1e   :  { %948 = vmatpush3.bf16.msra.mxu1 %v985_v6 }
  0x1f   :  { %920 = vmatpush3.bf16.msra.mxu0 %v979_v23  ;;  %949 = vmatprep.subr.bf16.mxu1 %v986_v7 }
  0x20   :  { %442 = vperm.xlu1 %971, %v348_v58  }
  0x21   :  { %437 = vperm.xlu0 %970, %v347_v55  }
  0x22   :  { %922 = vmatmul.mubr.bf16.vlgmr.msra.gmra.mrb[0].mxu0 %v770_v35  ;;  %950 = vmatpush3.bf16.msra.mxu1 %v986_v7 }
  0x23   :  { %925 = vmatprep.mubr.bf16.mxu0 %v771_v36  ;;  %951 = vmatprep.subr.bf16.mxu1 %v987_v8 }
  0x26   :  { %952 = vmatpush3.bf16.msra.mxu1 %v987_v8 }
  0x2a   :  { %926 = vmatmul.mubr.bf16.gmra.mrb[4].mxu0 %v772_v50 }
  0x2b   :  { %929 = vmatprep.mubr.bf16.mxu0 %v773_v52 }
  0x32   :  { %930 = vmatmul.mubr.bf16.gmra.mrb[8].mxu0 %v774_v63 }
  0x33   :  { %933 = vmatprep.mubr.bf16.mxu0 %v775_v0 }
  0x3a   :  { %934 = vmatmul.mubr.bf16.gmra.mrb[12].mxu0 %v776_v5 }
  0x83   :  { %v378_v10 = vpop.permute.xlu1 %377 }
  0x84   :  { %v368_v9 = vpop.permute.xlu0 %367 }
  0x87   :  { %v383_v12 = vpop.permute.xlu1 %382 }
  0x88   :  { %v373_v11 = vpop.permute.xlu0 %372 }
  0x8b   :  { %v393_v14 = vpop.permute.xlu1 %392 }
  0x8c   :  { %v388_v13 = vpop.permute.xlu0 %387 }
  0x8f   :  { %v403_v20 = vpop.permute.xlu1 %402 }
  0x90   :  { %v398_v15 = vpop.permute.xlu0 %397 }
  0x93   :  { %v413_v34 = vpop.permute.xlu1 %412 }
  0x94   :  { %v1171_v30 = vpop.permute.xlu0 %407 }
  0x97   :  { %v423_v55 = vpop.permute.xlu1 %422 }
  0x98   :  { %v418_v49 = vpop.permute.xlu0 %417 }
  0x9c   :  { %v428_v1 = vpop.permute.xlu0 %427 }
  0xf5   :  { %v923_v16 = vpop.f32.mrb[0].mxu0 }
  0xf6   :  { %v447_v18 = vmul.f32 %v923_v16, %v378_v10  ;;  %v235_v19 = vpop.f32.mrb[1].mxu0 }
  0xf7   :  { %v445_v21 = vmul.f32 %v368_v9, %v235_v19  ;;  %v924_v22 = vpop.f32.mrb[2].mxu0 }
  0xf8   :  { %v470_v23 = vadd.f32 %v1166_v17, %v447_v18  ;;  %v448_v24 = vmul.f32 %v924_v22, %v383_v12  ;;  %v238_v25 = vpop.f32.mrb[3].mxu0 }
  0xf9   :  { %v468_v26 = vadd.f32 %v1166_v17, %v445_v21  ;;  %v446_v27 = vmul.f32 %v373_v11, %v238_v25 }
  0xfa   :  { %v486_v28 = vmax.f32 %v470_v23, 0.0  ;;  %v471_v29 = vadd.f32 %v1166_v17, %v448_v24 }
  0xfb   :  { %v484_v31 = vmax.f32 %v468_v26, 0.0  ;;  %v469_v32 = vadd.f32 %v1166_v17, %v446_v27 }
  0xfc   :  { %v487_v33 = vmax.f32 %v471_v29, 0.0  ;;  %v502_v37 = vmul.f32 %v486_v28, %v378_v10  ;;  %v433_v10 = vpop.permute.xlu1 %432 }
  0xfd   :  { %v485_v35 = vmax.f32 %v469_v32, 0.0  ;;  %v927_v36 = vpop.f32.mrb[4].mxu0  ;;  %v500_v43 = vmul.f32 %v484_v31, %v368_v9 }
  0xfe   :  { %v503_v38 = vmul.f32 %v487_v33, %v383_v12  ;;  %v451_v39 = vmul.f32 %v927_v36, %v398_v15  ;;  %v251_v40 = vpop.f32.mrb[5].mxu0 }
  0xff   :  { %v449_v41 = vmul.f32 %v388_v13, %v251_v40  ;;  %v928_v42 = vpop.f32.mrb[6].mxu0  ;;  %v501_v44 = vmul.f32 %v485_v35, %v373_v11 }
 0x100   :  { %v474_v45 = vadd.f32 %v1166_v17, %v451_v39  ;;  %v452_v46 = vmul.f32 %v928_v42, %v403_v20  ;;  %v254_v47 = vpop.f32.mrb[7].mxu0  ;;  %v517_v48 = vpack.c.bf16 %v503_v38, %v502_v37  ;;  %v443_v27 = vpop.permute.xlu1 %442 }
 0x101   :  { %v472_v50 = vadd.f32 %v1166_v17, %v449_v41  ;;  %v450_v51 = vmul.f32 %v393_v14, %v254_v47  ;;  %v516_v52 = vpack.c.bf16 %v501_v44, %v500_v43 }
 0x102   :  { %v490_v53 = vmax.f32 %v474_v45, 0.0  ;;  %v475_v54 = vadd.f32 %v1166_v17, %v452_v46 }
 0x103   :  { %v488_v56 = vmax.f32 %v472_v50, 0.0  ;;  %v473_v57 = vadd.f32 %v1166_v17, %v450_v51  ;;  %953 = vmatprep.mubr.bf16.mxu1 %v516_v52 }
 0x104   :  { %v491_v58 = vmax.f32 %v475_v54, 0.0  ;;  %954 = vmatmul.mubr.bf16.vlgmr.msra.gmra.mrb[0].mxu1 %v517_v48  ;;  %v506_v61 = vmul.f32 %v490_v53, %v398_v15 }
 0x105   :  { %v489_v59 = vmax.f32 %v473_v57, 0.0  ;;  %v931_v60 = vpop.f32.mrb[8].mxu0  ;;  %v504_v2 = vmul.f32 %v488_v56, %v388_v13 }
 0x106   :  { %v507_v62 = vmul.f32 %v491_v58, %v403_v20  ;;  %v455_v63 = vmul.f32 %v931_v60, %v418_v49  ;;  %v267_v0 = vpop.f32.mrb[9].mxu0  ;;  %v438_v20 = vpop.permute.xlu0 %437 }
 0x107   :  { %v505_v3 = vmul.f32 %v489_v59, %v393_v14  ;;  %v453_v4 = vmul.f32 %v1171_v30, %v267_v0  ;;  %v932_v5 = vpop.f32.mrb[10].mxu0 }
 0x108   :  { %v478_v6 = vadd.f32 %v1166_v17, %v455_v63  ;;  %v456_v7 = vmul.f32 %v932_v5, %v423_v55  ;;  %v270_v8 = vpop.f32.mrb[11].mxu0  ;;  %v519_v9 = vpack.c.bf16 %v507_v62, %v506_v61 }
 0x109   :  { %v476_v11 = vadd.f32 %v1166_v17, %v453_v4  ;;  %v454_v12 = vmul.f32 %v413_v34, %v270_v8  ;;  %v518_v16 = vpack.c.bf16 %v505_v3, %v504_v2 }
 0x10a   :  { %v494_v15 = vmax.f32 %v478_v6, 0.0  ;;  %v479_v18 = vadd.f32 %v1166_v17, %v456_v7 }
 0x10b   :  { %v492_v19 = vmax.f32 %v476_v11, 0.0  ;;  %v477_v13 = vadd.f32 %v1166_v17, %v454_v12  ;;  %957 = vmatprep.mubr.bf16.mxu1 %v518_v16 }
 0x10c   :  { %v495_v14 = vmax.f32 %v479_v18, 0.0  ;;  %958 = vmatmul.mubr.bf16.gmra.mrb[4].mxu1 %v519_v9  ;;  %v510_v23 = vmul.f32 %v494_v15, %v418_v49 }
 0x10d   :  { %v493_v21 = vmax.f32 %v477_v13, 0.0  ;;  %v935_v22 = vpop.f32.mrb[12].mxu0  ;;  %v508_v28 = vmul.f32 %v492_v19, %v1171_v30 }
 0x10e   :  { %v511_v24 = vmul.f32 %v495_v14, %v423_v55  ;;  %v459_v25 = vmul.f32 %v935_v22, %v438_v20  ;;  %v283_v26 = vpop.f32.mrb[13].mxu0 }
 0x10f   :  { %v509_v29 = vmul.f32 %v493_v21, %v413_v34  ;;  %v457_v31 = vmul.f32 %v428_v1, %v283_v26  ;;  %v936_v32 = vpop.f32.mrb[14].mxu0 }
 0x110   :  { %v482_v33 = vadd.f32 %v1166_v17, %v459_v25  ;;  %v460_v35 = vmul.f32 %v936_v32, %v443_v27  ;;  %v286_v36 = vpop.f32.mrb[15].mxu0  ;;  %v521_v37 = vpack.c.bf16 %v511_v24, %v510_v23 }
 0x111   :  { %v480_v38 = vadd.f32 %v1166_v17, %v457_v31  ;;  %v458_v39 = vmul.f32 %v433_v10, %v286_v36  ;;  %v520_v40 = vpack.c.bf16 %v509_v29, %v508_v28 }
 0x112   :  { %v498_v41 = vmax.f32 %v482_v33, 0.0  ;;  %v483_v42 = vadd.f32 %v1166_v17, %v460_v35 }
 0x113   :  { %v496_v43 = vmax.f32 %v480_v38, 0.0  ;;  %v481_v44 = vadd.f32 %v1166_v17, %v458_v39  ;;  %961 = vmatprep.mubr.bf16.mxu1 %v520_v40 }
 0x114   :  { %v499_v30 = vmax.f32 %v483_v42, 0.0  ;;  %962 = vmatmul.mubr.bf16.gmra.mrb[8].mxu1 %v521_v37  ;;  %v514_v45 = vmul.f32 %v498_v41, %v438_v20 }
 0x115   :  { %v497_v34 = vmax.f32 %v481_v44, 0.0  ;;  %v512_v47 = vmul.f32 %v496_v43, %v428_v1 }
 0x116   :  { %v515_v46 = vmul.f32 %v499_v30, %v443_v27 }
 0x117   :  { %v513_v48 = vmul.f32 %v497_v34, %v433_v10 }
 0x118   :  { %v523_v49 = vpack.c.bf16 %v515_v46, %v514_v45 }
 0x119   :  { %v522_v50 = vpack.c.bf16 %v513_v48, %v512_v47 }
 0x11b   :  { %965 = vmatprep.mubr.bf16.mxu1 %v522_v50 }
 0x11c   :  { %966 = vmatmul.mubr.bf16.gmra.mrb[12].mxu1 %v523_v49 }
 0x1d7   :  { %v955_v51 = vpop.f32.mrb[0].mxu1 }
 0x1d8   :  { %v622_v52 = vpop.f32.mrb[1].mxu1 }
 0x1d9   :  { %v956_v53 = vpop.f32.mrb[2].mxu1 }
 0x1da   :  { %v834_v54 = vpack.c.bf16 %v956_v53, %v955_v51  ;;  %v625_v55 = vpop.f32.mrb[3].mxu1 }
 0x1db   :  { %v829_v56 = vpack.c.bf16 %v625_v55, %v622_v52 }
 0x1dc   :  { %866 = vst [vmem:[%s1217_s5 + $0x8] sm:$0xff] %v834_v54  }
 0x1dd   :  { %830 = vst [vmem:[%s1217_s5] sm:$0xff] %v829_v56  }
 0x1df   :  { %v959_v17 = vpop.f32.mrb[4].mxu1 }
 0x1e0   :  { %v638_v57 = vpop.f32.mrb[5].mxu1 }
 0x1e1   :  { %v960_v58 = vpop.f32.mrb[6].mxu1 }
 0x1e2   :  { %v844_v59 = vpack.c.bf16 %v960_v58, %v959_v17  ;;  %v641_v60 = vpop.f32.mrb[7].mxu1 }
 0x1e3   :  { %v839_v61 = vpack.c.bf16 %v641_v60, %v638_v57 }
 0x1e4   :  { %868 = vst [vmem:[%s1217_s5 + $0x18] sm:$0xff] %v844_v59  }
 0x1e5   :  { %867 = vst [vmem:[%s1217_s5 + $0x10] sm:$0xff] %v839_v61  }
 0x1e7   :  { %v963_v62 = vpop.f32.mrb[8].mxu1 }
 0x1e8   :  { %v654_v63 = vpop.f32.mrb[9].mxu1 }
 0x1e9   :  { %v964_v0 = vpop.f32.mrb[10].mxu1 }
 0x1ea   :  { %v854_v1 = vpack.c.bf16 %v964_v0, %v963_v62  ;;  %v657_v2 = vpop.f32.mrb[11].mxu1 }
 0x1eb   :  { %v849_v3 = vpack.c.bf16 %v657_v2, %v654_v63 }
 0x1ec   :  { %870 = vst [vmem:[%s1217_s5 + $0x28] sm:$0xff] %v854_v1  }
 0x1ed   :  { %869 = vst [vmem:[%s1217_s5 + $0x20] sm:$0xff] %v849_v3  }
 0x1ef   :  { %v967_v4 = vpop.f32.mrb[12].mxu1 }
 0x1f0   :  { %v670_v5 = vpop.f32.mrb[13].mxu1 }
 0x1f1   :  { %v968_v6 = vpop.f32.mrb[14].mxu1 }
 0x1f2   :  { %v864_v7 = vpack.c.bf16 %v968_v6, %v967_v4  ;;  %v673_v8 = vpop.f32.mrb[15].mxu1 }
 0x1f3   :  { %v859_v9 = vpack.c.bf16 %v673_v8, %v670_v5 }
 0x1f4   :  { %872 = vst [vmem:[%s1217_s5 + $0x38] sm:$0xff] %v864_v7  }
 0x1f5   :  { %871 = vst [vmem:[%s1217_s5 + $0x30] sm:$0xff] %v859_v9  }

</bundles_post_ra>
